<compile_context>
chip_gen: v6e
topology: v6e:2x2x1
jax: 0.10.0
libtpu: 0.0.40
codegen_flags: <defaults>
</compile_context>

<pallas_src>
import functools

import numpy as np

import jax
import jax.numpy as jnp
from jax.experimental import pallas as pl
from jax.experimental.pallas import tpu as pltpu


_FILT_1D = {
    1: (1,),
    2: (1, 1),
    3: (1, 2, 1),
    4: (1, 3, 3, 1),
    5: (1, 4, 6, 4, 1),
    6: (1, 5, 10, 10, 5, 1),
    7: (1, 6, 15, 20, 15, 6, 1),
}

_PAD_MODE = {"refl": "reflect", "reflect": "reflect",
             "repl": "replicate", "replicate": "replicate",
             "zero": "zero"}
_JNP_PAD_MODE = {"reflect": "reflect", "replicate": "edge", "zero": "constant"}


def _pad_source_index(i, n, mode):
    """Map a (possibly out-of-range) unpadded index to its source index under
    the given pad mode, or None for a zero row."""
    if 0 <= i < n:
        return i
    if mode == "reflect":
        j = i
        if j < 0:
            j = -j
        if j >= n:
            j = 2 * (n - 1) - j
        assert 0 <= j < n, (i, n)
        return j
    if mode == "replicate":
        return min(max(i, 0), n - 1)
    return None  # zero padding


def _build_axis_matrix(n_in, n_out, taps, stride, pad_lo, mode, scale):
    """Constant (n_in, n_out) matrix implementing pad + blur + stride along one
    axis: out[o] = sum_k taps[k]*scale * x[padmap(stride*o + k - pad_lo)]."""
    m = np.zeros((n_in, n_out), np.float32)
    for o in range(n_out):
        for k, t in enumerate(taps):
            src = _pad_source_index(stride * o + k - pad_lo, n_in, mode)
            if src is not None:
                m[src, o] += float(t) * scale
    return m


def _pad_axis_value(x, axis, pad_lo, pad_hi, extra, mode):
    """Pad a value along `axis` by concatenating reflected / edge / zero rows
    (plus `extra` trailing alignment rows that are never read)."""
    n = x.shape[axis]

    def row(i):
        idx = [slice(None)] * x.ndim
        idx[axis] = slice(i, i + 1)
        return x[tuple(idx)]

    def zero_row():
        shp = list(x.shape)
        shp[axis] = 1
        return jnp.zeros(shp, x.dtype)

    parts = []
    for j in range(pad_lo):
        src = _pad_source_index(j - pad_lo, n, mode)
        parts.append(zero_row() if src is None else row(src))
    parts.append(x)
    for m in range(pad_hi):
        src = _pad_source_index(n + m, n, mode)
        parts.append(zero_row() if src is None else row(src))
    for _ in range(extra):
        parts.append(zero_row())
    if len(parts) == 1:
        return x
    return jnp.concatenate(parts, axis=axis)


def _grouped_window_pass(x, axis, taps, stride, n_out):
    """Blur + stride-`stride` downsample along an outer axis of a value via a
    layout-preserving (position, phase) reshape, contiguous window slices,
    integer taps and symmetric-tap pairing."""
    n = x.shape[axis]
    assert n % stride == 0, (n, stride)
    grouped = x.shape[:axis] + (n // stride, stride) + x.shape[axis + 1:]
    xg = x.reshape(grouped)
    n_taps = len(taps)

    def window(k):
        q, r = divmod(k, stride)
        idx = [slice(None)] * xg.ndim
        idx[axis] = slice(q, q + n_out)   # contiguous window of groups
        idx[axis + 1] = r                 # static phase (dim is dropped)
        return xg[tuple(idx)]

    acc = None
    done = [False] * n_taps
    for k in range(n_taps):
        if done[k]:
            continue
        k2 = n_taps - 1 - k
        if k2 > k and taps[k2] == taps[k]:   # symmetric pairing: (x_k + x_{K-1-k})
            done[k] = done[k2] = True
            win = window(k) + window(k2)
        else:
            done[k] = True
            win = window(k)
        t = float(taps[k])
        term = win if t == 1.0 else t * win
        acc = term if acc is None else acc + term
    return acc


def _blurpool3d_kernel(x_ref, mw_ref, o_ref, hp_ref, *, taps, stride,
                       pad_lo, pad_hi, pad_mode, out_d, out_h, out_w):
    # x_ref:  (Cb, D, H, W) raw (unpadded) NCDHW block, n squeezed
    # mw_ref: (W, Wo) constant blur/pad/normalization matrix for the W axis
    # o_ref:  (Cb, Do, Ho, Wo)
    # hp_ref: (Cb, Do, H + pad_lo + pad_hi, Wo) f32 scratch for the H pass
    cb, d_in, h_in, w_in = x_ref.shape
    n_taps = len(taps)

    # ---- W pass (lane axis): MXU matmul; pad + 1/sum^3 folded into mw. ----
    x = x_ref[...].astype(jnp.float32)                           # upcast once
    xw = jnp.dot(x.reshape(cb * d_in * h_in, w_in), mw_ref[...],
                 preferred_element_type=jnp.float32)
    xw = xw.reshape(cb, d_in, h_in, out_w)                       # (Cb, D, H, Wo)

    # ---- D pass (outer axis): in-VMEM pad + contiguous windows. ----
    dp = d_in + pad_lo + pad_hi
    extra_d = (-dp) % stride                                     # never read
    xd = _pad_axis_value(xw, 1, pad_lo, pad_hi, extra_d, pad_mode)
    acc_d = _grouped_window_pass(xd, 1, taps, stride, out_d)     # (Cb, Do, H, Wo)

    # ---- H pass (sublane axis): pad into scratch, strided pl.ds ref loads
    # on the smallest intermediate. ----
    hp_ref[...] = _pad_axis_value(acc_d, 2, pad_lo, pad_hi, 0, pad_mode)

    def rows(k):
        if stride == 1:
            return hp_ref[:, :, pl.ds(k, out_h), :]
        return hp_ref[:, :, pl.ds(k, out_h, stride), :]

    acc = None
    done = [False] * n_taps
    for k in range(n_taps):
        if done[k]:
            continue
        k2 = n_taps - 1 - k
        if k2 > k and taps[k2] == taps[k]:
            done[k] = done[k2] = True
            win = rows(k) + rows(k2)
        else:
            done[k] = True
            win = rows(k)
        t = float(taps[k])
        term = win if t == 1.0 else t * win
        acc = term if acc is None else acc + term
    o_ref[...] = acc.astype(o_ref.dtype)


def _vmem_plan():
    """Generation-aware scoped-VMEM limit and per-step block budget."""
    cap = 64 << 20                      # conservative default (v7x physical)
    try:
        cap = int(pltpu.get_tpu_info().vmem_capacity_bytes)
    except Exception:
        pass
    vmem_limit = int(cap * 3 // 4)      # ~96 MiB on v5e/v6e, ~48 MiB on v7x
    budget = max(4 << 20, int(cap * 3 // 10))
    return vmem_limit, budget


def _pick_channels_per_block(n_batch, num_channels, budget, footprint):
    """Largest divisor of C whose full per-step footprint fits the budget,
    capped so the grid has >= 2 steps whenever possible."""
    divisors = [v for v in range(1, num_channels + 1) if num_channels % v == 0]
    cap = num_channels
    if n_batch == 1 and num_channels > 1:
        cap = max(v for v in divisors if v < num_channels)
    best = 1
    for v in divisors:
        if v <= cap and footprint(v) <= budget:
            best = v
    return best


def blurpool3d(x, *, filt_size=4, stride=2, pad_off=0, pad_type="reflect"):
    """BlurPool3D forward. x: (N, C, D, H, W) -> (N, C, Do, Ho, Wo)."""
    # TODO(synk): anisotropic (list) filt_size / explicit padding_size are not
    # ported; the module's default isotropic int filt_size is supported.
    assert isinstance(filt_size, int)
    n, c, d, h, w = x.shape
    k = filt_size
    taps = _FILT_1D[k]
    s_sum = float(sum(taps))
    pad_lo = (k - 1) // 2 + pad_off
    pad_hi = -(-(k - 1) // 2) + pad_off
    mode = _PAD_MODE[pad_type]

    dp, hp, wp = d + pad_lo + pad_hi, h + pad_lo + pad_hi, w + pad_lo + pad_hi
    do = (dp - k) // stride + 1
    ho = (hp - k) // stride + 1
    wo = (wp - k) // stride + 1
    if mode == "reflect":
        p_max = max(pad_lo, pad_hi)
        assert p_max <= d - 1 and p_max <= h - 1 and p_max <= w - 1, \
            "reflection pad larger than spatial dim"

    # Constant W-axis matrix: reflection pad + the full 1/sum(filt)^3
    # normalization folded in; the D/H passes use raw integer taps.
    mw = jnp.asarray(_build_axis_matrix(w, wo, taps, stride, pad_lo, mode,
                                        scale=1.0 / (s_sum ** 3)))

    vmem_limit, budget = _vmem_plan()
    dp_a = dp + ((-dp) % stride)
    in_isz = jnp.dtype(x.dtype).itemsize
    out_isz = in_isz

    def footprint(cb):
        f32 = 4
        return (2 * cb * d * h * w * in_isz        # input block (double buffered)
                + cb * d * h * w * f32             # f32 upcast of the block
                + cb * d * h * wo * f32            # W-pass output
                + cb * dp_a * h * wo * f32         # D-padded value
                + cb * do * h * wo * f32           # D-pass accumulator
                + cb * do * hp * wo * f32          # H-pass scratch
                + cb * do * ho * wo * f32          # H-pass accumulator
                + 2 * cb * do * ho * wo * out_isz  # output block (double buffered)
                + 2 * w * wo * f32)                # filter-matrix operand

    cb = _pick_channels_per_block(n, c, budget, footprint)
    # TODO(synk): if even one channel per step exceeds the budget (tiny C with
    # a huge D*H*W volume), add output-depth tiling with halo DMA
    # (memory_space=pl.ANY + make_async_copy) to bound per-step VMEM.
    # TODO(synk): for very small W (deep discriminator layers) lane
    # utilization drops; folding several channels' Wo into the lane axis
    # would recover density.

    kernel = functools.partial(
        _blurpool3d_kernel, taps=taps, stride=stride, pad_lo=pad_lo,
        pad_hi=pad_hi, pad_mode=mode, out_d=do, out_h=ho, out_w=wo)

    return pl.pallas_call(
        kernel,
        out_shape=jax.ShapeDtypeStruct((n, c, do, ho, wo), x.dtype),
        grid_spec=pltpu.PrefetchScalarGridSpec(
            num_scalar_prefetch=0,
            grid=(n, c // cb),
            in_specs=[pl.BlockSpec((None, cb, d, h, w),
                                   lambda ni, ci: (ni, ci, 0, 0, 0)),
                      pl.BlockSpec((w, wo), lambda ni, ci: (0, 0))],
            out_specs=pl.BlockSpec((None, cb, do, ho, wo),
                                   lambda ni, ci: (ni, ci, 0, 0, 0)),
            scratch_shapes=[pltpu.VMEM((cb, do, hp, wo), jnp.float32)]),
        compiler_params=pltpu.CompilerParams(
            dimension_semantics=("parallel", "parallel"),
            vmem_limit_bytes=vmem_limit),
    )(x, mw)


def _blurpool3d_reference(x, *, filt_size=4, stride=2, pad_off=0,
                          pad_type="reflect"):
    """Pure-JAX reference: pad + grouped (depthwise) conv3d."""
    a = jnp.asarray(_FILT_1D[filt_size], jnp.float32)
    filt = a[:, None, None] * a[None, :, None] * a[None, None, :]
    filt = filt / jnp.sum(filt)
    k = filt_size
    pad_lo = (k - 1) // 2 + pad_off
    pad_hi = -(-(k - 1) // 2) + pad_off
    mode = _JNP_PAD_MODE[_PAD_MODE[pad_type]]
    xp = jnp.pad(x, ((0, 0), (0, 0), (pad_lo, pad_hi), (pad_lo, pad_hi),
                     (pad_lo, pad_hi)), mode=mode)
    c = x.shape[1]
    wgt = jnp.broadcast_to(filt[None, None], (c, 1, k, k, k)).astype(jnp.float32)
    out = jax.lax.conv_general_dilated(
        xp.astype(jnp.float32), wgt,
        window_strides=(stride, stride, stride), padding="VALID",
        dimension_numbers=("NCDHW", "OIDHW", "NCDHW"),
        feature_group_count=c)
    return out.astype(x.dtype)


if __name__ == "__main__":
    key = jax.random.PRNGKey(0)
    n, c, d, h, w = 2, 4, 8, 16, 16
    x = jax.random.normal(key, (n, c, d, h, w), dtype=jnp.float32)

    # Default BlurPool3D config: filt_size=4, stride=2, reflection padding.
    out = blurpool3d(x, filt_size=4, stride=2)
    jax.block_until_ready(out)
    ref = _blurpool3d_reference(x, filt_size=4, stride=2)
    assert out.shape == ref.shape == (n, c, 4, 8, 8), (out.shape, ref.shape)
    assert jnp.allclose(out, ref, atol=1e-5, rtol=1e-5), float(
        jnp.max(jnp.abs(out - ref)))

    # Odd filter size exercises the general tap / pad / pairing path.
    out3 = blurpool3d(x, filt_size=3, stride=2)
    jax.block_until_ready(out3)
    ref3 = _blurpool3d_reference(x, filt_size=3, stride=2)
    assert out3.shape == ref3.shape
    assert jnp.allclose(out3, ref3, atol=1e-5, rtol=1e-5), float(
        jnp.max(jnp.abs(out3 - ref3)))

    # filt_size=1 reduces to the module's pure strided-subsample branch.
    out1 = blurpool3d(x, filt_size=1, stride=2)
    jax.block_until_ready(out1)
    ref1 = x[:, :, ::2, ::2, ::2]
    assert out1.shape == ref1.shape
    assert jnp.allclose(out1, ref1, atol=1e-6, rtol=1e-6)

    print("KERNEL_OK")
</pallas_src>

<mosaic_0001>
module attributes {stable_mosaic.version = 11 : i64} {
  func.func @_blurpool3d_kernel(%arg0: i32, %arg1: i32, %arg2: memref<1x4x8x16x16xf32, #tpu.memory_space<vmem>>, %arg3: memref<16x8xf32, #tpu.memory_space<vmem>>, %arg4: memref<1x4x4x8x8xf32, #tpu.memory_space<vmem>>, %arg5: memref<4x4x19x8xf32, #tpu.memory_space<vmem>>) attributes {dimension_semantics = [#tpu.dimension_semantics<parallel>, #tpu.dimension_semantics<parallel>], iteration_bounds = array<i64: 2, 1>, scalar_prefetch = 0 : i64, scratch_operands = 1 : i64, tpu.core_type = #tpu.core_type<tc>, window_params = [{transform_indices = @transform_0, window_bounds = array<i64: 1, 4, 8, 16, 16>}, {pipeline_mode = #tpu.pipeline_mode<synchronous>, transform_indices = @transform_1, window_bounds = array<i64: 16, 8>}, {transform_indices = @transform_2, window_bounds = array<i64: 1, 4, 4, 8, 8>}]} {
    %c0 = arith.constant 0 : index
    %c0_0 = arith.constant 0 : index
    %c0_1 = arith.constant 0 : index
    %c0_2 = arith.constant 0 : index
    %c0_3 = arith.constant 0 : index
    %0 = vector.load %arg2[%c0, %c0_0, %c0_1, %c0_2, %c0_3] : memref<1x4x8x16x16xf32, #tpu.memory_space<vmem>>, vector<1x4x8x16x16xf32>
    %1 = vector.shape_cast %0 : vector<1x4x8x16x16xf32> to vector<4x8x16x16xf32>
    %2 = vector.shape_cast %1 : vector<4x8x16x16xf32> to vector<512x16xf32>
    %c0_4 = arith.constant 0 : index
    %c0_5 = arith.constant 0 : index
    %3 = vector.load %arg3[%c0_4, %c0_5] : memref<16x8xf32, #tpu.memory_space<vmem>>, vector<16x8xf32>
    %cst = arith.constant dense<0.000000e+00> : vector<512x8xf32>
    %4 = tpu.matmul %2, %3, %cst {dimension_numbers = #tpu.dot_dimension_numbers<[1], [0], [0], [1], [0, 0, 1, 1], [], []>} : vector<512x16xf32>, vector<16x8xf32>, vector<512x8xf32> -> vector<512x8xf32>
    %5 = vector.shape_cast %4 : vector<512x8xf32> to vector<4x8x16x8xf32>
    %6 = vector.extract_strided_slice %5 {offsets = [0, 1, 0, 0], sizes = [4, 1, 16, 8], strides = [1, 1, 1, 1]} : vector<4x8x16x8xf32> to vector<4x1x16x8xf32>
    %7 = vector.extract_strided_slice %5 {offsets = [0, 6, 0, 0], sizes = [4, 1, 16, 8], strides = [1, 1, 1, 1]} : vector<4x8x16x8xf32> to vector<4x1x16x8xf32>
    %8 = vector.extract_strided_slice %5 {offsets = [0, 5, 0, 0], sizes = [4, 1, 16, 8], strides = [1, 1, 1, 1]} : vector<4x8x16x8xf32> to vector<4x1x16x8xf32>
    %cst_6 = arith.constant 0.000000e+00 : f32
    %9 = vector.broadcast %cst_6 : f32 to vector<4x1x16x8xf32>
    %10 = tpu.concatenate %6, %5, %7, %8, %9 in 1 : vector<4x1x16x8xf32>, vector<4x8x16x8xf32>, vector<4x1x16x8xf32>, vector<4x1x16x8xf32>, vector<4x1x16x8xf32> -> vector<4x12x16x8xf32>
    %11 = vector.shape_cast %10 : vector<4x12x16x8xf32> to vector<4x6x2x16x8xf32>
    %12 = vector.extract_strided_slice %11 {offsets = [0, 0, 0, 0, 0], sizes = [4, 4, 1, 16, 8], strides = [1, 1, 1, 1, 1]} : vector<4x6x2x16x8xf32> to vector<4x4x1x16x8xf32>
    %13 = vector.shape_cast %12 : vector<4x4x1x16x8xf32> to vector<4x4x16x8xf32>
    %14 = vector.extract_strided_slice %11 {offsets = [0, 1, 1, 0, 0], sizes = [4, 4, 1, 16, 8], strides = [1, 1, 1, 1, 1]} : vector<4x6x2x16x8xf32> to vector<4x4x1x16x8xf32>
    %15 = vector.shape_cast %14 : vector<4x4x1x16x8xf32> to vector<4x4x16x8xf32>
    %16 = arith.addf %13, %15 : vector<4x4x16x8xf32>
    %17 = vector.extract_strided_slice %11 {offsets = [0, 0, 1, 0, 0], sizes = [4, 4, 1, 16, 8], strides = [1, 1, 1, 1, 1]} : vector<4x6x2x16x8xf32> to vector<4x4x1x16x8xf32>
    %18 = vector.shape_cast %17 : vector<4x4x1x16x8xf32> to vector<4x4x16x8xf32>
    %19 = vector.extract_strided_slice %11 {offsets = [0, 1, 0, 0, 0], sizes = [4, 4, 1, 16, 8], strides = [1, 1, 1, 1, 1]} : vector<4x6x2x16x8xf32> to vector<4x4x1x16x8xf32>
    %20 = vector.shape_cast %19 : vector<4x4x1x16x8xf32> to vector<4x4x16x8xf32>
    %21 = arith.addf %18, %20 : vector<4x4x16x8xf32>
    %cst_7 = arith.constant 3.000000e+00 : f32
    %22 = vector.broadcast %cst_7 : f32 to vector<4x4x16x8xf32>
    %23 = arith.mulf %22, %21 : vector<4x4x16x8xf32>
    %24 = arith.addf %16, %23 : vector<4x4x16x8xf32>
    %25 = vector.extract_strided_slice %24 {offsets = [0, 0, 1, 0], sizes = [4, 4, 1, 8], strides = [1, 1, 1, 1]} : vector<4x4x16x8xf32> to vector<4x4x1x8xf32>
    %26 = vector.extract_strided_slice %24 {offsets = [0, 0, 14, 0], sizes = [4, 4, 1, 8], strides = [1, 1, 1, 1]} : vector<4x4x16x8xf32> to vector<4x4x1x8xf32>
    %27 = vector.extract_strided_slice %24 {offsets = [0, 0, 13, 0], sizes = [4, 4, 1, 8], strides = [1, 1, 1, 1]} : vector<4x4x16x8xf32> to vector<4x4x1x8xf32>
    %28 = tpu.concatenate %25, %24, %26, %27 in 2 : vector<4x4x1x8xf32>, vector<4x4x16x8xf32>, vector<4x4x1x8xf32>, vector<4x4x1x8xf32> -> vector<4x4x19x8xf32>
    %c0_8 = arith.constant 0 : index
    %c0_9 = arith.constant 0 : index
    %c0_10 = arith.constant 0 : index
    %c0_11 = arith.constant 0 : index
    %29 = vector.load %arg5[%c0_8, %c0_9, %c0_10, %c0_11] : memref<4x4x19x8xf32, #tpu.memory_space<vmem>>, vector<4x4x19x8xf32>
    tpu.vector_store %arg5[%c0_8, %c0_9, %c0_10, %c0_11], %28 {strides = array<i32>} : memref<4x4x19x8xf32, #tpu.memory_space<vmem>>, vector<4x4x19x8xf32>,
    %c0_12 = arith.constant 0 : index
    %c0_13 = arith.constant 0 : index
    %c0_14 = arith.constant 0 : index
    %c0_15 = arith.constant 0 : index
    %30 = tpu.strided_load %arg5[%c0_12, %c0_13, %c0_14, %c0_15] {strides = array<i32: 1, 1, 2, 1>} : memref<4x4x19x8xf32, #tpu.memory_space<vmem>>, vector<4x4x8x8xf32>
    %c0_16 = arith.constant 0 : index
    %c0_17 = arith.constant 0 : index
    %c3 = arith.constant 3 : index
    %c0_18 = arith.constant 0 : index
    %31 = tpu.strided_load %arg5[%c0_16, %c0_17, %c3, %c0_18] {strides = array<i32: 1, 1, 2, 1>} : memref<4x4x19x8xf32, #tpu.memory_space<vmem>>, vector<4x4x8x8xf32>
    %32 = arith.addf %30, %31 : vector<4x4x8x8xf32>
    %c0_19 = arith.constant 0 : index
    %c0_20 = arith.constant 0 : index
    %c1 = arith.constant 1 : index
    %c0_21 = arith.constant 0 : index
    %33 = tpu.strided_load %arg5[%c0_19, %c0_20, %c1, %c0_21] {strides = array<i32: 1, 1, 2, 1>} : memref<4x4x19x8xf32, #tpu.memory_space<vmem>>, vector<4x4x8x8xf32>
    %c0_22 = arith.constant 0 : index
    %c0_23 = arith.constant 0 : index
    %c2 = arith.constant 2 : index
    %c0_24 = arith.constant 0 : index
    %34 = tpu.strided_load %arg5[%c0_22, %c0_23, %c2, %c0_24] {strides = array<i32: 1, 1, 2, 1>} : memref<4x4x19x8xf32, #tpu.memory_space<vmem>>, vector<4x4x8x8xf32>
    %35 = arith.addf %33, %34 : vector<4x4x8x8xf32>
    %cst_25 = arith.constant 3.000000e+00 : f32
    %36 = vector.broadcast %cst_25 : f32 to vector<4x4x8x8xf32>
    %37 = arith.mulf %36, %35 : vector<4x4x8x8xf32>
    %38 = arith.addf %32, %37 : vector<4x4x8x8xf32>
    %c0_26 = arith.constant 0 : index
    %c0_27 = arith.constant 0 : index
    %c0_28 = arith.constant 0 : index
    %c0_29 = arith.constant 0 : index
    %c0_30 = arith.constant 0 : index
    %39 = vector.load %arg4[%c0_26, %c0_27, %c0_28, %c0_29, %c0_30] : memref<1x4x4x8x8xf32, #tpu.memory_space<vmem>>, vector<1x4x4x8x8xf32>
    %40 = vector.shape_cast %39 : vector<1x4x4x8x8xf32> to vector<4x4x8x8xf32>
    %41 = vector.shape_cast %38 : vector<4x4x8x8xf32> to vector<1x4x4x8x8xf32>
    tpu.vector_store %arg4[%c0_26, %c0_27, %c0_28, %c0_29, %c0_30], %41 {strides = array<i32>} : memref<1x4x4x8x8xf32, #tpu.memory_space<vmem>>, vector<1x4x4x8x8xf32>,
    return
  }
  func.func @transform_0(%arg0: i32, %arg1: i32) -> (i32, i32, i32, i32, i32) {
    %c0_i32 = arith.constant 0 : i32
    %c0_i32_0 = arith.constant 0 : i32
    %c0_i32_1 = arith.constant 0 : i32
    %c0_i32_2 = arith.constant 0 : i32
    return %arg0, %arg1, %c0_i32, %c0_i32_0, %c0_i32_1 : i32, i32, i32, i32, i32
  }
  func.func @transform_1(%arg0: i32, %arg1: i32) -> (i32, i32) {
    %c0_i32 = arith.constant 0 : i32
    %c0_i32_0 = arith.constant 0 : i32
    %c0_i32_1 = arith.constant 0 : i32
    return %c0_i32, %c0_i32_0 : i32, i32
  }
  func.func @transform_2(%arg0: i32, %arg1: i32) -> (i32, i32, i32, i32, i32) {
    %c0_i32 = arith.constant 0 : i32
    %c0_i32_0 = arith.constant 0 : i32
    %c0_i32_1 = arith.constant 0 : i32
    %c0_i32_2 = arith.constant 0 : i32
    return %arg0, %arg1, %c0_i32, %c0_i32_0, %c0_i32_1 : i32, i32, i32, i32, i32
  }
}

</mosaic_0001>

<bundles_post_ra>
// kernel: tpu_custom_call.1
= control target key start
LH: loop header
LB: loop body
LE: loop exit
PB: predicated region body
PF: predicated region fallthrough
CT: control target
= control target key end

     0   :  { %7 = vsyncpa [#allocation4], 0  ;;  %s2672_s0 = inlined_call_operand.hbm [shape: f32[2,4,8,16,16], index: 0, kind: input, shape index: {}]   ;;  %s2673_s1 = inlined_call_operand.vmem [shape: f32[16,8], index: 1, kind: input, shape index: {}]   ;;  %s2674_s2 = inlined_call_operand.hbm [shape: f32[2,4,4,8,8], index: 2, kind: output, shape index: {}]  }
   0x1   :  { %9 = vsyncpa [#allocation4 + $0x1], 0 }
   0x2   :  { %10 = vsyncpa [#allocation5], 0 }
   0x3   :  { %12 = vsyncpa [#allocation5 + $0x1], 0  ;;  %s2038_s9 = smov 0   ;;  %s2040_s10 = smov 0  }
   0x4   :  { %s2042_s11 = smov 0   ;;  %s2044_s12 = smov 0  }
   0x5   :  { %s2046_s13 = smov 0   ;;  %s2048_s14 = smov 0  }
   0x6 LB: > { %s1590_s15 = sadd.s32 4294967295, %s2015_s14   ;;  %s1591_s16 = sadd.s32 4294967294, %s2015_s14   ;;  %s2015_s14 = sphi %s2048_s14, %s18_s14   ;;  %s2011_s13 = sphi %s2046_s13, %s2685_s13   ;;  %s2007_s12 = sphi %s2044_s12, %s2684_s12   ;;  %s2003_s11 = sphi %s2042_s11, %s2683_s11   ;;  %s1999_s10 = sphi %s2040_s10, %s2682_s10   ;;  %s1995_s9 = sphi %s2038_s9, %s2681_s9  }
   0x7   : > { %s30_s17 = sadd.s32 1, %s2011_s13  ;;  %s39_s18 = sadd.s32 1, %s2003_s11 }
   0x8   : > { %p32_p0 = scmp.ge.s32.totalorder %s30_s17, 2  ;;  %p46_p1 = scmp.ne.s32.totalorder %s2003_s11, %s1999_s10 }
   0x9   : > { %p47_p2 = scmp.eq.s32.totalorder %s2015_s14, 0  ;;  %p52_p3 = scmp.ne.s32.totalorder %s1999_s10, %s1995_s9 }
   0xa   : > { %s2687_s17 = smov (%p32_p0, %s30_s17), 0  ;;  %p53_p5 = scmp.eq.s32.totalorder %s1590_s15, 0 }
   0xb   : > { %p2079_p4 = por %p47_p2, %p46_p1  ;;  %s34_s20 = ssub.s32 %s2011_s13, %s2687_s17 }
   0xc   : > { %p99_p6 = scmp.eq.s32.totalorder %s1590_s15, 1  ;;  %p37_p7 = scmp.eq.s32.totalorder %s34_s20, 0 }
   0xd   : > { %p2085_p8 = por %p53_p5, %p52_p3  ;;  %p105_p10 = scmp.eq.s32.totalorder %s1591_s16, 1 }
   0xe   : > { %p2089_p9 = por %p99_p6, %p46_p1  ;;  %p1853_p13 = scmp.lt.s32.totalorder %s2015_s14, 2 }
   0xf   : > { %s2094_s23 = scalar_select %p37_p7, %s2003_s11, %s39_s18  }
  0x10   : > { %p2096_p11 = por %p105_p10, %p52_p3  ;;  %s128_s25 = sand.u32 1, %s2003_s11  }
  0x11   : > { %s1594_s26 = sshll.u32 %s128_s25, 9  ;;  %s1669_s27 = sshll.u32 %s2011_s13, 13 }
  0x12   : > { %s141_s30 = scalar_lea.hbm %s2672_s0, %s1669_s27  ;;  %s132_s3 = scalar_lea.vmem [#allocation3], %s1594_s26 }
  0x13   : > { %s142_s4 = sshll.u32 %s132_s3, 4  ;;  %p2109_p0 = pnand %p1853_p13, %p2079_p4  ;;  %s143_s4 = int_to_ptr.vmem [resolvable:$true] %s142_s4 }
  0x14   : > { %p1597_p1 = scmp.ge.s32.totalorder %s2015_s14, 1  ;;  %s129_s6 = scalar_lea.sflag [#allocation4], %s128_s25 }
  0x15   : > { %p1909_p2 = pneg %p2109_p0  ;;  %s1920_s7 = scalar_lea.vmem %s143_s4, 8192 }
  0x16   : > { %p1921_p3 = scmp.ne.s32.totalorder %s143_s4, %s1920_s7  ;;  %s2017_s8 = smov [#allocation3]  }
  0x17   : > { %s1925_s15 = sshll.u32 %s2017_s8, 4  ;;  %s1926_s15 = int_to_ptr.vmem [resolvable:$false] %s1925_s15 }
  0x18   : > { %p1923_p5 = pnand %p1921_p3, %p1909_p2  ;;  %s1927_s16 = scalar_lea.vmem %s1926_s15, 16384 }
  0x19   : > { %p1928_p7 = scmp.lt.s32.totalorder %s143_s4, %s1926_s15  ;;  %p1929_p10 = scmp.lt.s32.totalorder %s1927_s16, %s1920_s7 }
  0x1a   : > { %p1924_p6 = pneg %p1923_p5 }
  0x1b   : > { %p1930_p12 = por %p1929_p10, %p1928_p7 }
  0x1d   : > { %p1931_p4 = pnand %p1930_p12, %p1924_p6 }
  0x1f   : > { %1934 = shalt.err (!%p1931_p4)
}
  0x20   : > { %s2018_s18 = smov 128   ;;  %s2019_s19 = smov 8  }
  0x21   : > { %1848 = dma.hbm_to_vmem [thread:$0]  (!%p2109_p0), %s141_s30, 8192, %s143_s4, %s129_s6, %s2018_s18, %s2018_s18, %s2019_s19  }
  0x22   : > { %p150_p13 = scmp.lt.s32.totalorder %s2015_s14, 3 }
  0x24   : > { %p151_p2 = pnand %p1597_p1, %p150_p13 }
  0x25   : > { %s2122_s20 = sand.u32 (!%p151_p2), 1, %s1999_s10  }
  0x26   : > { %154 = sbr.rel (%p151_p2) target bundleno = 367 (0x16f), region = 28  ;;  %s1598_s25 = sshll.u32 (!%p151_p2), %s2122_s20, 9 }
  0x27   : > { %s157_s26 = scalar_lea.sflag (!%p151_p2), [#allocation4], %s2122_s20  ;;  %s2126_s27 = scalar_lea.vmem (!%p151_p2), [#allocation3], %s1598_s25 }
  0x2b   : > { %1986 = dma.done.wait (%p2085_p8), %s157_s26, 8192  }
  0x2c   : > { %1988 = vsyncadd (%p2085_p8), %s157_s26, 4294959104  ;;  %v248_v0 = vld [vmem:[%s2673_s1 + $0x8] sm:$0xff]  ;;  %v247_v1 = vld [vmem:[%s2673_s1] sm:$0xff]  ;;  %vm249_vm0 = vcmask 130048   ;;  %vm1019_vm1 = vcmask 1040384   ;;  %vm1212_vm2 = vcmask 1041408  }
  0x2d   : > { %1737 = vmatprep.subr.mxu0 %v248_v0  ;;  %1837 = vmatprep.subr.mxu1 %v248_v0  ;;  %v183_v2 = vld [vmem:[%s2126_s27] sm:$0xff]  ;;  %v184_v4 = vld [vmem:[%s2126_s27 + $0x8] sm:$0xff]  ;;  %v185_v6 = vld [vmem:[%s2126_s27 + $0x10] sm:$0xff]  ;;  %vm1232_vm3 = vcmask 59392   ;;  %vm1229_vm4 = vcmask 64512   ;;  %s1599_s21 = sshll.u32 %s2122_s20, 7 }
  0x2e   : > { %1738 = vmatpush3.msra.mxu0 %v248_v0  ;;  %1839 = vmatpush3.msra.mxu1 %v248_v0  ;;  %v215_v3 = vld [vmem:[%s2126_s27 + $0x100] sm:$0xff]  ;;  %v216_v5 = vld [vmem:[%s2126_s27 + $0x108] sm:$0xff]  ;;  %v217_v7 = vld [vmem:[%s2126_s27 + $0x110] sm:$0xff]  ;;  %s2373_s4 = scalar_lea.vmem [#allocation6], %s1599_s21  ;;  %s1670_s5 = sshll.u32 %s2007_s12, 11 }
  0x2f   : > { %1739 = vmatprep.subr.mxu0 %v247_v1  ;;  %1838 = vmatprep.subr.mxu1 %v247_v1  ;;  %v186_v8 = vld [vmem:[%s2126_s27 + $0x18] sm:$0xff]  ;;  %v187_v10 = vld [vmem:[%s2126_s27 + $0x20] sm:$0xff]  ;;  %v188_v12 = vld [vmem:[%s2126_s27 + $0x28] sm:$0xff]  ;;  %s1503_s6 = sshll.u32 %s2373_s4, 4  ;;  %s2618_s15 = scalar_lea.hbm %s2674_s2, %s1670_s5  ;;  %s2620_s6 = int_to_ptr.vmem [resolvable:$true] %s1503_s6 }
  0x30   : > { %1740 = vmatpush3.msra.mxu0 %v247_v1  ;;  %1840 = vmatpush3.msra.mxu1 %v247_v1  ;;  %v218_v9 = vld [vmem:[%s2126_s27 + $0x118] sm:$0xff]  ;;  %v219_v11 = vld [vmem:[%s2126_s27 + $0x120] sm:$0xff]  ;;  %v220_v13 = vld [vmem:[%s2126_s27 + $0x128] sm:$0xff]  ;;  %s1487_s12 = scalar_lea.sflag [#allocation5], %s2122_s20  ;;  %s1935_s16 = scalar_lea.vmem %s2620_s6, 2048 }
  0x31   : > { %1741 = vmatprep.mubr.msk.f32.mxu0 %vm249_vm0, %v183_v2  ;;  %1789 = vmatprep.mubr.msk.f32.mxu1 %vm249_vm0, %v215_v3  ;;  %v189_v14 = vld [vmem:[%s2126_s27 + $0x30] sm:$0xff]  ;;  %v190_v16 = vld [vmem:[%s2126_s27 + $0x38] sm:$0xff]  ;;  %v191_v18 = vld [vmem:[%s2126_s27 + $0x40] sm:$0xff]  ;;  %p1936_p8 = scmp.ne.s32.totalorder %s2620_s6, %s1935_s16  ;;  %s2020_s18 = smov [#allocation6]  }
  0x32   : > { %1742 = vmatmul.mubr.msk.f32.vlgmr.msra.gmra.mxu0 %vm249_vm0, %v184_v4  ;;  %1790 = vmatmul.mubr.msk.f32.vlgmr.msra.gmra.mxu1 %vm249_vm0, %v216_v5  ;;  %v221_v15 = vld [vmem:[%s2126_s27 + $0x130] sm:$0xff]  ;;  %v222_v17 = vld [vmem:[%s2126_s27 + $0x138] sm:$0xff]  ;;  %v223_v19 = vld [vmem:[%s2126_s27 + $0x140] sm:$0xff]  ;;  %s1939_s19 = sshll.u32 %s2020_s18, 4  ;;  %s1940_s19 = int_to_ptr.vmem [resolvable:$false] %s1939_s19 }
  0x33   : > { %1744 = vmatprep.mubr.msk.f32.mxu0 %vm249_vm0, %v185_v6  ;;  %1792 = vmatprep.mubr.msk.f32.mxu1 %vm249_vm0, %v217_v7  ;;  %v192_v20 = vld [vmem:[%s2126_s27 + $0x48] sm:$0xff]  ;;  %v193_v22 = vld [vmem:[%s2126_s27 + $0x50] sm:$0xff]  ;;  %v194_v24 = vld [vmem:[%s2126_s27 + $0x58] sm:$0xff]  ;;  %p1937_p12 = pnand %p1936_p8, %p2089_p9  ;;  %s1941_s25 = scalar_lea.vmem %s1940_s19, 4096 }
  0x34   : > { %v224_v21 = vld [vmem:[%s2126_s27 + $0x148] sm:$0xff]  ;;  %v225_v23 = vld [vmem:[%s2126_s27 + $0x150] sm:$0xff]  ;;  %v226_v25 = vld [vmem:[%s2126_s27 + $0x158] sm:$0xff]  ;;  %p1942_p1 = scmp.lt.s32.totalorder %s2620_s6, %s1940_s19  ;;  %p1943_p3 = scmp.lt.s32.totalorder %s1941_s25, %s1935_s16 }
  0x35   : > { %v195_v26 = vld [vmem:[%s2126_s27 + $0x60] sm:$0xff]  ;;  %v196_v28 = vld [vmem:[%s2126_s27 + $0x68] sm:$0xff]  ;;  %v197_v30 = vld [vmem:[%s2126_s27 + $0x70] sm:$0xff]  ;;  %p1938_p0 = pneg %p1937_p12 }
  0x36   : > { %1745 = vmatmul.mubr.msk.f32.gmra.mxu0 %vm249_vm0, %v186_v8  ;;  %1793 = vmatmul.mubr.msk.f32.gmra.mxu1 %vm249_vm0, %v218_v9  ;;  %v227_v27 = vld [vmem:[%s2126_s27 + $0x160] sm:$0xff]  ;;  %v228_v29 = vld [vmem:[%s2126_s27 + $0x168] sm:$0xff]  ;;  %v229_v31 = vld [vmem:[%s2126_s27 + $0x170] sm:$0xff]  ;;  %p1944_p5 = por %p1943_p3, %p1942_p1 }
  0x37   : > { %1747 = vmatprep.mubr.msk.f32.mxu0 %vm249_vm0, %v187_v10  ;;  %1795 = vmatprep.mubr.msk.f32.mxu1 %vm249_vm0, %v219_v11  ;;  %v198_v32 = vld [vmem:[%s2126_s27 + $0x78] sm:$0xff]  ;;  %v199_v34 = vld [vmem:[%s2126_s27 + $0x80] sm:$0xff]  ;;  %v200_v36 = vld [vmem:[%s2126_s27 + $0x88] sm:$0xff] }
  0x38   : > { %v230_v33 = vld [vmem:[%s2126_s27 + $0x178] sm:$0xff]  ;;  %v231_v35 = vld [vmem:[%s2126_s27 + $0x180] sm:$0xff]  ;;  %v232_v37 = vld [vmem:[%s2126_s27 + $0x188] sm:$0xff]  ;;  %p1945_p6 = pnand %p1944_p5, %p1938_p0 }
  0x39   : > { %v201_v38 = vld [vmem:[%s2126_s27 + $0x90] sm:$0xff]  ;;  %v202_v40 = vld [vmem:[%s2126_s27 + $0x98] sm:$0xff]  ;;  %v203_v42 = vld [vmem:[%s2126_s27 + $0xa0] sm:$0xff] }
  0x3a   : > { %1748 = vmatmul.mubr.msk.f32.gmra.mxu0 %vm249_vm0, %v188_v12  ;;  %1796 = vmatmul.mubr.msk.f32.gmra.mxu1 %vm249_vm0, %v220_v13  ;;  %v233_v39 = vld [vmem:[%s2126_s27 + $0x190] sm:$0xff]  ;;  %v234_v41 = vld [vmem:[%s2126_s27 + $0x198] sm:$0xff]  ;;  %v235_v43 = vld [vmem:[%s2126_s27 + $0x1a0] sm:$0xff] }
  0x3b   : > { %1750 = vmatprep.mubr.msk.f32.mxu0 %vm249_vm0, %v189_v14  ;;  %1798 = vmatprep.mubr.msk.f32.mxu1 %vm249_vm0, %v221_v15  ;;  %v204_v44 = vld [vmem:[%s2126_s27 + $0xa8] sm:$0xff]  ;;  %v205_v46 = vld [vmem:[%s2126_s27 + $0xb0] sm:$0xff]  ;;  %v206_v48 = vld [vmem:[%s2126_s27 + $0xb8] sm:$0xff] }
  0x3c   : > { %v236_v45 = vld [vmem:[%s2126_s27 + $0x1a8] sm:$0xff]  ;;  %v237_v47 = vld [vmem:[%s2126_s27 + $0x1b0] sm:$0xff]  ;;  %v238_v49 = vld [vmem:[%s2126_s27 + $0x1b8] sm:$0xff] }
  0x3d   : > { %v207_v50 = vld [vmem:[%s2126_s27 + $0xc0] sm:$0xff]  ;;  %v208_v52 = vld [vmem:[%s2126_s27 + $0xc8] sm:$0xff]  ;;  %v209_v54 = vld [vmem:[%s2126_s27 + $0xd0] sm:$0xff] }
  0x3e   : > { %1751 = vmatmul.mubr.msk.f32.gmra.mxu0 %vm249_vm0, %v190_v16  ;;  %1799 = vmatmul.mubr.msk.f32.gmra.mxu1 %vm249_vm0, %v222_v17  ;;  %v239_v51 = vld [vmem:[%s2126_s27 + $0x1c0] sm:$0xff]  ;;  %v240_v53 = vld [vmem:[%s2126_s27 + $0x1c8] sm:$0xff]  ;;  %v241_v55 = vld [vmem:[%s2126_s27 + $0x1d0] sm:$0xff] }
  0x3f   : > { %1753 = vmatprep.mubr.msk.f32.mxu0 %vm249_vm0, %v191_v18  ;;  %1801 = vmatprep.mubr.msk.f32.mxu1 %vm249_vm0, %v223_v19  ;;  %v210_v56 = vld [vmem:[%s2126_s27 + $0xd8] sm:$0xff]  ;;  %v211_v58 = vld [vmem:[%s2126_s27 + $0xe0] sm:$0xff]  ;;  %v212_v60 = vld [vmem:[%s2126_s27 + $0xe8] sm:$0xff] }
  0x40   : > { %v242_v57 = vld [vmem:[%s2126_s27 + $0x1d8] sm:$0xff]  ;;  %v243_v59 = vld [vmem:[%s2126_s27 + $0x1e0] sm:$0xff]  ;;  %v244_v61 = vld [vmem:[%s2126_s27 + $0x1e8] sm:$0xff] }
  0x41   : > { %v213_v62 = vld [vmem:[%s2126_s27 + $0xf0] sm:$0xff]  ;;  %v214_v0 = vld [vmem:[%s2126_s27 + $0xf8] sm:$0xff] }
  0x42   : > { %1754 = vmatmul.mubr.msk.f32.gmra.mxu0 %vm249_vm0, %v192_v20  ;;  %1802 = vmatmul.mubr.msk.f32.gmra.mxu1 %vm249_vm0, %v224_v21  ;;  %v245_v63 = vld [vmem:[%s2126_s27 + $0x1f0] sm:$0xff]  ;;  %v246_v1 = vld [vmem:[%s2126_s27 + $0x1f8] sm:$0xff] }
  0x43   : > { %1756 = vmatprep.mubr.msk.f32.mxu0 %vm249_vm0, %v193_v22  ;;  %1804 = vmatprep.mubr.msk.f32.mxu1 %vm249_vm0, %v225_v23 }
  0x46   : > { %1757 = vmatmul.mubr.msk.f32.gmra.mxu0 %vm249_vm0, %v194_v24  ;;  %1805 = vmatmul.mubr.msk.f32.gmra.mxu1 %vm249_vm0, %v226_v25 }
  0x47   : > { %1759 = vmatprep.mubr.msk.f32.mxu0 %vm249_vm0, %v195_v26  ;;  %1807 = vmatprep.mubr.msk.f32.mxu1 %vm249_vm0, %v227_v27 }
  0x4a   : > { %1760 = vmatmul.mubr.msk.f32.gmra.mxu0 %vm249_vm0, %v196_v28  ;;  %1808 = vmatmul.mubr.msk.f32.gmra.mxu1 %vm249_vm0, %v228_v29 }
  0x4b   : > { %1762 = vmatprep.mubr.msk.f32.mxu0 %vm249_vm0, %v197_v30  ;;  %1810 = vmatprep.mubr.msk.f32.mxu1 %vm249_vm0, %v229_v31 }
  0x4e   : > { %1763 = vmatmul.mubr.msk.f32.gmra.mxu0 %vm249_vm0, %v198_v32  ;;  %1811 = vmatmul.mubr.msk.f32.gmra.mxu1 %vm249_vm0, %v230_v33 }
  0x4f   : > { %1765 = vmatprep.mubr.msk.f32.mxu0 %vm249_vm0, %v199_v34  ;;  %1813 = vmatprep.mubr.msk.f32.mxu1 %vm249_vm0, %v231_v35 }
  0x52   : > { %1766 = vmatmul.mubr.msk.f32.gmra.mxu0 %vm249_vm0, %v200_v36  ;;  %1814 = vmatmul.mubr.msk.f32.gmra.mxu1 %vm249_vm0, %v232_v37 }
  0x53   : > { %1768 = vmatprep.mubr.msk.f32.mxu0 %vm249_vm0, %v201_v38  ;;  %1816 = vmatprep.mubr.msk.f32.mxu1 %vm249_vm0, %v233_v39 }
  0x56   : > { %1769 = vmatmul.mubr.msk.f32.gmra.mxu0 %vm249_vm0, %v202_v40  ;;  %1817 = vmatmul.mubr.msk.f32.gmra.mxu1 %vm249_vm0, %v234_v41 }
  0x57   : > { %1771 = vmatprep.mubr.msk.f32.mxu0 %vm249_vm0, %v203_v42  ;;  %1819 = vmatprep.mubr.msk.f32.mxu1 %vm249_vm0, %v235_v43 }
  0x5a   : > { %1772 = vmatmul.mubr.msk.f32.gmra.mxu0 %vm249_vm0, %v204_v44  ;;  %1820 = vmatmul.mubr.msk.f32.gmra.mxu1 %vm249_vm0, %v236_v45 }
  0x5b   : > { %1774 = vmatprep.mubr.msk.f32.mxu0 %vm249_vm0, %v205_v46  ;;  %1822 = vmatprep.mubr.msk.f32.mxu1 %vm249_vm0, %v237_v47 }
  0x5e   : > { %1775 = vmatmul.mubr.msk.f32.gmra.mxu0 %vm249_vm0, %v206_v48  ;;  %1823 = vmatmul.mubr.msk.f32.gmra.mxu1 %vm249_vm0, %v238_v49 }
  0x5f   : > { %1777 = vmatprep.mubr.msk.f32.mxu0 %vm249_vm0, %v207_v50  ;;  %1825 = vmatprep.mubr.msk.f32.mxu1 %vm249_vm0, %v239_v51 }
  0x62   : > { %1778 = vmatmul.mubr.msk.f32.gmra.mxu0 %vm249_vm0, %v208_v52  ;;  %1826 = vmatmul.mubr.msk.f32.gmra.mxu1 %vm249_vm0, %v240_v53 }
  0x63   : > { %1780 = vmatprep.mubr.msk.f32.mxu0 %vm249_vm0, %v209_v54  ;;  %1828 = vmatprep.mubr.msk.f32.mxu1 %vm249_vm0, %v241_v55 }
  0x66   : > { %1781 = vmatmul.mubr.msk.f32.gmra.mxu0 %vm249_vm0, %v210_v56  ;;  %1829 = vmatmul.mubr.msk.f32.gmra.mxu1 %vm249_vm0, %v242_v57 }
  0x67   : > { %1783 = vmatprep.mubr.msk.f32.mxu0 %vm249_vm0, %v211_v58  ;;  %1831 = vmatprep.mubr.msk.f32.mxu1 %vm249_vm0, %v243_v59 }
  0x6a   : > { %1784 = vmatmul.mubr.msk.f32.gmra.mxu0 %vm249_vm0, %v212_v60  ;;  %1832 = vmatmul.mubr.msk.f32.gmra.mxu1 %vm249_vm0, %v244_v61 }
  0x6b   : > { %1786 = vmatprep.mubr.msk.f32.mxu0 %vm249_vm0, %v213_v62  ;;  %1834 = vmatprep.mubr.msk.f32.mxu1 %vm249_vm0, %v245_v63 }
  0x6e   : > { %1787 = vmatmul.mubr.msk.f32.gmra.mxu0 %vm249_vm0, %v214_v0  ;;  %1835 = vmatmul.mubr.msk.f32.gmra.mxu1 %vm249_vm0, %v246_v1 }
  0xf2   : > { %v1743_v2 = vpop.f32.mrf.mxu0  ;;  %v1791_v3 = vpop.f32.mrf.mxu1 }
  0xf4   : > { %v508_v4 = vpop.f32.mrf.mxu0  ;;  %v668_v5 = vpop.f32.mrf.mxu1 }
  0xf6   : > { %v2266_v6 = vpop.f32.mrf.mxu0  ;;  %v2268_v7 = vpop.f32.mrf.mxu1 }
  0xf7   : > { %v860_v8 = vadd.f32 %v2266_v6, %v1743_v2  ;;  %v876_v9 = vadd.f32 %v2268_v7, %v1791_v3 }
  0xf8   : > { %v2272_v10 = vpop.f32.mrf.mxu0  ;;  %v2274_v11 = vpop.f32.mrf.mxu1 }
  0xf9   : > { %v859_v12 = vadd.f32 %v2272_v10, %v508_v4  ;;  %v875_v13 = vadd.f32 %v2274_v11, %v668_v5  ;;  %v892_v16 = vmul.f32 3.0, %v860_v8  ;;  %v908_v17 = vmul.f32 3.0, %v876_v9 }
  0xfa   : > { %v1749_v14 = vpop.f32.mrf.mxu0  ;;  %v1797_v15 = vpop.f32.mrf.mxu1 }
  0xfb   : > { %v828_v18 = vadd.f32 %v1749_v14, %v2266_v6  ;;  %v844_v19 = vadd.f32 %v1797_v15, %v2268_v7  ;;  %v891_v26 = vmul.f32 3.0, %v859_v12  ;;  %v907_v27 = vmul.f32 3.0, %v875_v13 }
  0xfc   : > { %v528_v20 = vpop.f32.mrf.mxu0  ;;  %v688_v21 = vpop.f32.mrf.mxu1 }
  0xfd   : > { %v924_v22 = vadd.f32 %v892_v16, %v828_v18  ;;  %v940_v23 = vadd.f32 %v908_v17, %v844_v19  ;;  %v827_v24 = vadd.f32 %v528_v20, %v2272_v10  ;;  %v843_v25 = vadd.f32 %v688_v21, %v2274_v11 }
  0xfe   : > { %v2282_v28 = vpop.f32.mrf.mxu0  ;;  %v2284_v29 = vpop.f32.mrf.mxu1 }
  0xff   : > { %v1021_v30 = vrot.slane %v924_v22, 7  ;;  %v1116_v31 = vrot.slane %v924_v22, 5  ;;  %v1148_v32 = vrot.slane %v924_v22, 3  ;;  %v1045_v33 = vrot.slane %v940_v23, 7 }
 0x100   : > { %v1124_v34 = vrot.slane %v940_v23, 5  ;;  %v1156_v35 = vrot.slane %v940_v23, 3  ;;  %v923_v36 = vadd.f32 %v891_v26, %v827_v24  ;;  %v939_v37 = vadd.f32 %v907_v27, %v843_v25  ;;  %v2286_v38 = vpop.f32.mrf.mxu0  ;;  %v2288_v39 = vpop.f32.mrf.mxu1 }
 0x101   : > { %v1196_v40 = vsel %vm1019_vm1, %v1021_v30, %v1116_v31  ;;  %v862_v41 = vadd.f32 %v2282_v28, %v1749_v14  ;;  %v878_v42 = vadd.f32 %v2284_v29, %v1797_v15  ;;  %v861_v43 = vadd.f32 %v2286_v38, %v528_v20 }
 0x102   : > { %v1213_v44 = vsel %vm1212_vm2, %v1196_v40, %v1148_v32  ;;  %v1204_v45 = vsel %vm1019_vm1, %v1045_v33, %v1124_v34  ;;  %v971_v46 = vrot.slane %v923_v36, 1  ;;  %v1020_v47 = vrot.slane %v923_v36, 7  ;;  %v1755_v48 = vpop.f32.mrf.mxu0  ;;  %v1803_v49 = vpop.f32.mrf.mxu1 }
 0x103   : > { %1233 = vst.msk [vmem:[#allocation2 + $0x10] sm:$0x7] %vm1232_vm3, %v1213_v44  ;;  %v1221_v50 = vsel %vm1212_vm2, %v1204_v45, %v1156_v35  ;;  %v979_v51 = vrot.slane %v939_v37, 1  ;;  %v1044_v52 = vrot.slane %v939_v37, 7  ;;  %v894_v55 = vmul.f32 3.0, %v862_v41 }
 0x104   : > { %1257 = vst.msk [vmem:[#allocation2 + $0xd0] sm:$0x7] %vm1232_vm3, %v1221_v50  ;;  %v1022_v53 = vsel %vm1019_vm1, %v1020_v47, %v1021_v30  ;;  %v1180_v54 = vsel %vm1019_vm1, %v971_v46, %v1020_v47  ;;  %v910_v56 = vmul.f32 3.0, %v878_v42  ;;  %v548_v57 = vpop.f32.mrf.mxu0  ;;  %v708_v58 = vpop.f32.mrf.mxu1  ;;  %v877_v61 = vadd.f32 %v2288_v39, %v688_v21 }
 0x105   : > { %1230 = vst.msk [vmem:[#allocation2] sm:$0xff] %vm1229_vm4, %v1180_v54  ;;  %1231 = vst.msk [vmem:[#allocation2 + $0x8] sm:$0xff] %vm1229_vm4, %v1022_v53  ;;  %v1046_v59 = vsel %vm1019_vm1, %v1044_v52, %v1045_v33  ;;  %v1188_v60 = vsel %vm1019_vm1, %v979_v51, %v1044_v52  ;;  %v830_v62 = vadd.f32 %v1755_v48, %v2266_v6  ;;  %v893_v63 = vmul.f32 3.0, %v861_v43 }
 0x106   : > { %1255 = vst.msk [vmem:[#allocation2 + $0xc0] sm:$0xff] %vm1229_vm4, %v1188_v60  ;;  %1256 = vst.msk [vmem:[#allocation2 + $0xc8] sm:$0xff] %vm1229_vm4, %v1046_v59  ;;  %v846_v0 = vadd.f32 %v1803_v49, %v2268_v7  ;;  %v829_v1 = vadd.f32 %v548_v57, %v2272_v10  ;;  %v845_v2 = vadd.f32 %v708_v58, %v2274_v11  ;;  %v2312_v3 = vpop.f32.mrf.mxu0  ;;  %v2314_v4 = vpop.f32.mrf.mxu1  ;;  %v909_v5 = vmul.f32 3.0, %v877_v61 }
 0x107   : > { %v926_v8 = vadd.f32 %v894_v55, %v830_v62  ;;  %v864_v6 = vadd.f32 %v2312_v3, %v1755_v48  ;;  %v880_v33 = vadd.f32 %v2314_v4, %v1803_v49 }
 0x108   : > { %v942_v9 = vadd.f32 %v910_v56, %v846_v0  ;;  %v925_v12 = vadd.f32 %v893_v63, %v829_v1  ;;  %v2317_v13 = vpop.f32.mrf.mxu0  ;;  %v2319_v14 = vpop.f32.mrf.mxu1  ;;  %v941_v10 = vadd.f32 %v909_v5, %v845_v2 }
 0x109   : > { %v1024_v15 = vrot.slane %v926_v8, 7  ;;  %v1117_v7 = vrot.slane %v926_v8, 5  ;;  %v1149_v16 = vrot.slane %v926_v8, 3  ;;  %v863_v34 = vadd.f32 %v2317_v13, %v548_v57 }
 0x10a   : > { %v1048_v17 = vrot.slane %v942_v9, 7  ;;  %v1125_v11 = vrot.slane %v942_v9, 5  ;;  %v1157_v18 = vrot.slane %v942_v9, 3  ;;  %v972_v19 = vrot.slane %v925_v12, 1  ;;  %v2321_v20 = vpop.f32.mrf.mxu0  ;;  %v2323_v21 = vpop.f32.mrf.mxu1 }
 0x10b   : > { %v1197_v22 = vsel %vm1019_vm1, %v1024_v15, %v1117_v7  ;;  %v1023_v23 = vrot.slane %v925_v12, 7  ;;  %v980_v24 = vrot.slane %v941_v10, 1  ;;  %v1047_v25 = vrot.slane %v941_v10, 7 }
 0x10c   : > { %v1279_v26 = vld [vmem:[#allocation2] ss:$2 sm:$0xff]  ;;  %v1311_v27 = vld [vmem:[#allocation2 + $0x3] ss:$2 sm:$0xff]  ;;  %v1214_v31 = vsel %vm1212_vm2, %v1197_v22, %v1149_v16  ;;  %v1205_v32 = vsel %vm1019_vm1, %v1048_v17, %v1125_v11  ;;  %v2330_v35 = vpop.f32.mrf.mxu0  ;;  %v2332_v36 = vpop.f32.mrf.mxu1  ;;  %v879_v45 = vadd.f32 %v2319_v14, %v708_v58  ;;  %v896_v56 = vmul.f32 3.0, %v864_v6 }
 0x10d   : > { %v1359_v30 = vld [vmem:[#allocation2 + $0x1] ss:$2 sm:$0xff]  ;;  %v1391_v37 = vld [vmem:[#allocation2 + $0x2] ss:$2 sm:$0xff]  ;;  %1236 = vst.msk [vmem:[#allocation2 + $0x28] sm:$0x7] %vm1232_vm3, %v1214_v31  ;;  %v1222_v42 = vsel %vm1212_vm2, %v1205_v32, %v1157_v18  ;;  %v1025_v43 = vsel %vm1019_vm1, %v1023_v23, %v1024_v15  ;;  %v1181_v44 = vsel %vm1019_vm1, %v972_v19, %v1023_v23  ;;  %v1049_v49 = vsel %vm1019_vm1, %v1047_v25, %v1048_v17 }
 0x10e   : > { %v1295_v40 = vld [vmem:[#allocation2 + $0xc0] ss:$2 sm:$0xff]  ;;  %v1327_v41 = vld [vmem:[#allocation2 + $0xc3] ss:$2 sm:$0xff]  ;;  %v1422_v46 = vadd.f32 %v1391_v37, %v1359_v30  ;;  %1260 = vst.msk [vmem:[#allocation2 + $0xe8] sm:$0x7] %vm1232_vm3, %v1222_v42  ;;  %v1189_v50 = vsel %vm1019_vm1, %v980_v24, %v1047_v25  ;;  %v1764_v51 = vpop.f32.mrf.mxu0  ;;  %v1812_v52 = vpop.f32.mrf.mxu1  ;;  %v1342_v53 = vadd.f32 %v1311_v27, %v1279_v26  ;;  %v832_v60 = vadd.f32 %v2321_v20, %v2282_v28 }
 0x10f   : > { %v1375_v47 = vld [vmem:[#allocation2 + $0xc1] ss:$2 sm:$0xff]  ;;  %v1407_v48 = vld [vmem:[#allocation2 + $0xc2] ss:$2 sm:$0xff]  ;;  %1234 = vst.msk [vmem:[#allocation2 + $0x18] sm:$0xff] %vm1229_vm4, %v1181_v44  ;;  %1235 = vst.msk [vmem:[#allocation2 + $0x20] sm:$0xff] %vm1229_vm4, %v1025_v43  ;;  %v1350_v54 = vadd.f32 %v1327_v41, %v1295_v40  ;;  %v848_v1 = vadd.f32 %v2323_v21, %v2284_v29  ;;  %v831_v2 = vadd.f32 %v2330_v35, %v2286_v38 }
 0x110   : > { %v1430_v55 = vadd.f32 %v1407_v48, %v1375_v47  ;;  %1258 = vst.msk [vmem:[#allocation2 + $0xd8] sm:$0xff] %vm1229_vm4, %v1189_v50  ;;  %1259 = vst.msk [vmem:[#allocation2 + $0xe0] sm:$0xff] %vm1229_vm4, %v1049_v49  ;;  %v1438_v57 = vmul.f32 3.0, %v1422_v46  ;;  %v912_v58 = vmul.f32 3.0, %v880_v33  ;;  %v895_v59 = vmul.f32 3.0, %v863_v34  ;;  %v578_v61 = vpop.f32.mrf.mxu0  ;;  %v738_v62 = vpop.f32.mrf.mxu1 }
 0x111   : > { %v911_v0 = vmul.f32 3.0, %v879_v45  ;;  %v2355_v8 = vadd.f32 %v2321_v20, %v2312_v3  ;;  %v928_v9 = vadd.f32 %v896_v56, %v832_v60  ;;  %v847_v28 = vadd.f32 %v2332_v36, %v2288_v39 }
 0x112   : > { %v1446_v63 = vmul.f32 3.0, %v1430_v55  ;;  %v1454_v5 = vadd.f32 %v1438_v57, %v1342_v53  ;;  %v2359_v12 = vpop.f32.mrf.mxu0  ;;  %v2361_v6 = vpop.f32.mrf.mxu1  ;;  %v2365_v29 = vadd.f32 %v2323_v21, %v2314_v4  ;;  %v944_v7 = vadd.f32 %v912_v58, %v848_v1 }
 0x113   : > { %v2369_v38 = vadd.f32 %v2330_v35, %v2317_v13  ;;  %v1027_v39 = vrot.slane %v928_v9, 7  ;;  %v1118_v3 = vrot.slane %v928_v9, 5  ;;  %v1150_v16 = vrot.slane %v928_v9, 3 }
 0x114   : > { %v1462_v15 = vadd.f32 %v1446_v63, %v1350_v54  ;;  %1470 = vst.msk [vmem:[%s2373_s4] sm:$0xff] %vm1229_vm4, %v1454_v5  ;;  %v927_v10 = vadd.f32 %v895_v59, %v831_v2  ;;  %v2377_v17 = vpop.f32.mrf.mxu0  ;;  %v2379_v4 = vpop.f32.mrf.mxu1  ;;  %v2385_v19 = vadd.f32 %v2332_v36, %v2319_v14  ;;  %v943_v22 = vadd.f32 %v911_v0, %v847_v28 }
 0x115   : > { %v866_v23 = vadd.f32 %v1764_v51, %v2321_v20  ;;  %v882_v24 = vadd.f32 %v1812_v52, %v2323_v21  ;;  %v1198_v31 = vsel %vm1019_vm1, %v1027_v39, %v1118_v3  ;;  %v865_v32 = vadd.f32 %v578_v61, %v2330_v35 }
 0x116   : > { %1478 = vst.msk [vmem:[%s2373_s4 + $0x40] sm:$0xff] %vm1229_vm4, %v1462_v15  ;;  %v1281_v11 = vld [vmem:[#allocation2 + $0x18] ss:$2 sm:$0xff]  ;;  %v1313_v13 = vld [vmem:[#allocation2 + $0x1b] ss:$2 sm:$0xff]  ;;  %v881_v33 = vadd.f32 %v738_v62, %v2332_v36  ;;  %v2392_v34 = vpop.f32.mrf.mxu0  ;;  %v2394_v37 = vpop.f32.mrf.mxu1  ;;  %v1215_v21 = vsel %vm1212_vm2, %v1198_v31, %v1150_v16  ;;  %v1051_v42 = vrot.slane %v944_v7, 7 }
 0x117   : > { %v1361_v18 = vld [vmem:[#allocation2 + $0x19] ss:$2 sm:$0xff]  ;;  %v1343_v25 = vadd.f32 %v1313_v13, %v1281_v11  ;;  %v1393_v26 = vld [vmem:[#allocation2 + $0x1a] ss:$2 sm:$0xff]  ;;  %1239 = vst.msk [vmem:[#allocation2 + $0x40] sm:$0x7] %vm1232_vm3, %v1215_v21  ;;  %v868_v15 = vadd.f32 %v2392_v34, %v2359_v12  ;;  %v884_v3 = vadd.f32 %v2394_v37, %v2361_v6 }
 0x118   : > { %v1297_v27 = vld [vmem:[#allocation2 + $0xd8] ss:$2 sm:$0xff]  ;;  %v1329_v30 = vld [vmem:[#allocation2 + $0xdb] ss:$2 sm:$0xff]  ;;  %v1423_v14 = vadd.f32 %v1393_v26, %v1361_v18  ;;  %v1126_v44 = vrot.slane %v944_v7, 5  ;;  %v1158_v45 = vrot.slane %v944_v7, 3  ;;  %v2398_v35 = vpop.f32.mrf.mxu0  ;;  %v2400_v36 = vpop.f32.mrf.mxu1 }
 0x119   : > { %v1351_v40 = vadd.f32 %v1329_v30, %v1297_v27  ;;  %v1377_v41 = vld [vmem:[#allocation2 + $0xd9] ss:$2 sm:$0xff]  ;;  %v1409_v20 = vld [vmem:[#allocation2 + $0xda] ss:$2 sm:$0xff]  ;;  %v973_v46 = vrot.slane %v927_v10, 1  ;;  %v1026_v48 = vrot.slane %v927_v10, 7 }
 0x11a   : > { %v1431_v43 = vadd.f32 %v1409_v20, %v1377_v41  ;;  %v1439_v47 = vmul.f32 3.0, %v1423_v14  ;;  %v981_v49 = vrot.slane %v943_v22, 1  ;;  %v1050_v50 = vrot.slane %v943_v22, 7  ;;  %v2403_v55 = vpop.f32.mrf.mxu0  ;;  %v2405_v56 = vpop.f32.mrf.mxu1 }
 0x11b   : > { %v1206_v52 = vsel %vm1019_vm1, %v1051_v42, %v1126_v44  ;;  %v898_v53 = vmul.f32 3.0, %v866_v23  ;;  %v914_v54 = vmul.f32 3.0, %v882_v24  ;;  %v1028_v59 = vsel %vm1019_vm1, %v1026_v48, %v1027_v39 }
 0x11c   : > { %v1447_v51 = vmul.f32 3.0, %v1431_v43  ;;  %v1455_v57 = vadd.f32 %v1439_v47, %v1343_v25  ;;  %v1223_v58 = vsel %vm1212_vm2, %v1206_v52, %v1158_v45  ;;  %v1182_v60 = vsel %vm1019_vm1, %v973_v46, %v1026_v48  ;;  %1238 = vst.msk [vmem:[#allocation2 + $0x38] sm:$0xff] %vm1229_vm4, %v1028_v59  ;;  %v2416_v1 = vpop.f32.mrf.mxu0  ;;  %v2418_v2 = vpop.f32.mrf.mxu1 }
 0x11d   : > { %1263 = vst.msk [vmem:[#allocation2 + $0x100] sm:$0x7] %vm1232_vm3, %v1223_v58  ;;  %v1052_v62 = vsel %vm1019_vm1, %v1050_v50, %v1051_v42  ;;  %v1190_v63 = vsel %vm1019_vm1, %v981_v49, %v1050_v50  ;;  %v930_v0 = vadd.f32 %v898_v53, %v2355_v8  ;;  %v946_v5 = vadd.f32 %v914_v54, %v2365_v29 }
 0x11e   : > { %v1463_v61 = vadd.f32 %v1447_v51, %v1351_v40  ;;  %1237 = vst.msk [vmem:[#allocation2 + $0x30] sm:$0xff] %vm1229_vm4, %v1182_v60  ;;  %1471 = vst.msk [vmem:[%s2373_s4 + $0x8] sm:$0xff] %vm1229_vm4, %v1455_v57  ;;  %v897_v9 = vmul.f32 3.0, %v865_v32  ;;  %v913_v28 = vmul.f32 3.0, %v881_v33  ;;  %v2431_v16 = vpop.f32.mrf.mxu0  ;;  %v2433_v10 = vpop.f32.mrf.mxu1  ;;  %v900_v23 = vmul.f32 3.0, %v868_v15 }
 0x11f   : > { %1261 = vst.msk [vmem:[#allocation2 + $0xf0] sm:$0xff] %vm1229_vm4, %v1190_v63  ;;  %1262 = vst.msk [vmem:[#allocation2 + $0xf8] sm:$0xff] %vm1229_vm4, %v1052_v62  ;;  %v1030_v8 = vrot.slane %v930_v0, 7  ;;  %v1119_v7 = vrot.slane %v930_v0, 5  ;;  %v1151_v39 = vrot.slane %v930_v0, 3  ;;  %v1054_v11 = vrot.slane %v946_v5, 7 }
 0x120   : > { %1479 = vst.msk [vmem:[%s2373_s4 + $0x48] sm:$0xff] %vm1229_vm4, %v1463_v61  ;;  %v1127_v13 = vrot.slane %v946_v5, 5  ;;  %v1159_v29 = vrot.slane %v946_v5, 3  ;;  %v929_v18 = vadd.f32 %v897_v9, %v2369_v38  ;;  %v945_v12 = vadd.f32 %v913_v28, %v2385_v19  ;;  %v2438_v25 = vpop.f32.mrf.mxu0  ;;  %v2440_v26 = vpop.f32.mrf.mxu1 }
 0x121   : > { %v1199_v22 = vsel %vm1019_vm1, %v1030_v8, %v1119_v7  ;;  %v916_v24 = vmul.f32 3.0, %v884_v3  ;;  %v867_v19 = vadd.f32 %v2398_v35, %v2377_v17  ;;  %v883_v42 = vadd.f32 %v2400_v36, %v2379_v4 }
 0x122   : > { %v1216_v6 = vsel %vm1212_vm2, %v1199_v22, %v1151_v39  ;;  %v1207_v27 = vsel %vm1019_vm1, %v1054_v11, %v1127_v13  ;;  %v974_v30 = vrot.slane %v929_v18, 1  ;;  %v1029_v31 = vrot.slane %v929_v18, 7  ;;  %v2461_v50 = vpop.f32.mrf.mxu0  ;;  %v2463_v4 = vpop.f32.mrf.mxu1 }
 0x123   : > { %1242 = vst.msk [vmem:[#allocation2 + $0x58] sm:$0x7] %vm1232_vm3, %v1216_v6  ;;  %v1224_v38 = vsel %vm1212_vm2, %v1207_v27, %v1159_v29  ;;  %v982_v32 = vrot.slane %v945_v12, 1  ;;  %v1053_v33 = vrot.slane %v945_v12, 7  ;;  %v836_v43 = vadd.f32 %v2403_v55, %v2392_v34 }
 0x124   : > { %1266 = vst.msk [vmem:[#allocation2 + $0x118] sm:$0x7] %vm1232_vm3, %v1224_v38  ;;  %v1031_v20 = vsel %vm1019_vm1, %v1029_v31, %v1030_v8  ;;  %v1183_v21 = vsel %vm1019_vm1, %v974_v30, %v1029_v31  ;;  %v852_v49 = vadd.f32 %v2405_v56, %v2394_v37  ;;  %v899_v57 = vmul.f32 3.0, %v867_v19  ;;  %v2475_v39 = vpop.f32.mrf.mxu0  ;;  %v2477_v3 = vpop.f32.mrf.mxu1 }
 0x125   : > { %v1283_v14 = vld [vmem:[#allocation2 + $0x30] ss:$2 sm:$0xff]  ;;  %v1315_v40 = vld [vmem:[#allocation2 + $0x33] ss:$2 sm:$0xff]  ;;  %1240 = vst.msk [vmem:[#allocation2 + $0x48] sm:$0xff] %vm1229_vm4, %v1183_v21  ;;  %1241 = vst.msk [vmem:[#allocation2 + $0x50] sm:$0xff] %vm1229_vm4, %v1031_v20  ;;  %v1055_v17 = vsel %vm1019_vm1, %v1053_v33, %v1054_v11  ;;  %v1191_v48 = vsel %vm1019_vm1, %v982_v32, %v1053_v33  ;;  %v932_v60 = vadd.f32 %v900_v23, %v836_v43 }
 0x126   : > { %v1363_v41 = vld [vmem:[#allocation2 + $0x31] ss:$2 sm:$0xff]  ;;  %v1344_v44 = vadd.f32 %v1315_v40, %v1283_v14  ;;  %v1395_v45 = vld [vmem:[#allocation2 + $0x32] ss:$2 sm:$0xff]  ;;  %1264 = vst.msk [vmem:[#allocation2 + $0x108] sm:$0xff] %vm1229_vm4, %v1191_v48  ;;  %1265 = vst.msk [vmem:[#allocation2 + $0x110] sm:$0xff] %vm1229_vm4, %v1055_v17  ;;  %v948_v61 = vadd.f32 %v916_v24, %v852_v49  ;;  %v835_v62 = vadd.f32 %v2416_v1, %v2398_v35  ;;  %v2496_v21 = vpop.f32.mrf.mxu1 }
 0x127   : > { %v1299_v46 = vld [vmem:[#allocation2 + $0xf0] ss:$2 sm:$0xff]  ;;  %v1331_v47 = vld [vmem:[#allocation2 + $0xf3] ss:$2 sm:$0xff]  ;;  %v1424_v51 = vadd.f32 %v1395_v45, %v1363_v41  ;;  %v915_v58 = vmul.f32 3.0, %v883_v42  ;;  %v851_v0 = vadd.f32 %v2418_v2, %v2400_v36  ;;  %v870_v5 = vadd.f32 %v2431_v16, %v2403_v55 }
 0x128   : > { %v1352_v52 = vadd.f32 %v1331_v47, %v1299_v46  ;;  %v1379_v53 = vld [vmem:[#allocation2 + $0xf1] ss:$2 sm:$0xff]  ;;  %v1411_v54 = vld [vmem:[#allocation2 + $0xf2] ss:$2 sm:$0xff]  ;;  %v886_v9 = vadd.f32 %v2433_v10, %v2405_v56  ;;  %v1033_v15 = vrot.slane %v932_v60, 7  ;;  %v1120_v8 = vrot.slane %v932_v60, 5 }
 0x129   : > { %v1432_v59 = vadd.f32 %v1411_v54, %v1379_v53  ;;  %v1440_v63 = vmul.f32 3.0, %v1424_v51  ;;  %v1152_v7 = vrot.slane %v932_v60, 3  ;;  %v1057_v13 = vrot.slane %v948_v61, 7  ;;  %v2507_v60 = vpop.f32.mrf.mxu1 }
 0x12a   : > { %v1128_v29 = vrot.slane %v948_v61, 5  ;;  %v1160_v18 = vrot.slane %v948_v61, 3  ;;  %v1200_v55 = vsel %vm1019_vm1, %v1033_v15, %v1120_v8  ;;  %v931_v12 = vadd.f32 %v899_v57, %v835_v62 }
 0x12b   : > { %v1448_v28 = vmul.f32 3.0, %v1432_v59  ;;  %v1456_v11 = vadd.f32 %v1440_v63, %v1344_v44  ;;  %v947_v23 = vadd.f32 %v915_v58, %v851_v0  ;;  %v1217_v27 = vsel %vm1212_vm2, %v1200_v55, %v1152_v7 }
 0x12c   : > { %v1285_v56 = vld [vmem:[#allocation2 + $0x48] ss:$2 sm:$0xff]  ;;  %v1317_v24 = vld [vmem:[#allocation2 + $0x4b] ss:$2 sm:$0xff]  ;;  %v1208_v30 = vsel %vm1019_vm1, %v1057_v13, %v1128_v29  ;;  %v869_v31 = vadd.f32 %v2438_v25, %v2416_v1  ;;  %v885_v38 = vadd.f32 %v2440_v26, %v2418_v2  ;;  %1245 = vst.msk [vmem:[#allocation2 + $0x70] sm:$0x7] %vm1232_vm3, %v1217_v27  ;;  %v838_v41 = vadd.f32 %v2461_v50, %v2392_v34  ;;  %v1782_v1 = vpop.f32.mrf.mxu0 }
 0x12d   : > { %v1464_v22 = vadd.f32 %v1448_v28, %v1352_v52  ;;  %1472 = vst.msk [vmem:[%s2373_s4 + $0x10] sm:$0xff] %vm1229_vm4, %v1456_v11  ;;  %v1365_v6 = vld [vmem:[#allocation2 + $0x49] ss:$2 sm:$0xff]  ;;  %v1345_v32 = vadd.f32 %v1317_v24, %v1285_v56  ;;  %v1397_v33 = vld [vmem:[#allocation2 + $0x4a] ss:$2 sm:$0xff]  ;;  %v1225_v40 = vsel %vm1212_vm2, %v1208_v30, %v1160_v18  ;;  %v854_v20 = vadd.f32 %v2463_v4, %v2394_v37 }
 0x12e   : > { %v1301_v19 = vld [vmem:[#allocation2 + $0x108] ss:$2 sm:$0xff]  ;;  %v1333_v14 = vld [vmem:[#allocation2 + $0x10b] ss:$2 sm:$0xff]  ;;  %v1425_v2 = vadd.f32 %v1397_v33, %v1365_v6  ;;  %1269 = vst.msk [vmem:[#allocation2 + $0x130] sm:$0x7] %vm1232_vm3, %v1225_v40  ;;  %v2505_v59 = vpop.f32.mrf.mxu0  ;;  %v853_v28 = vadd.f32 %v2477_v3, %v2400_v36 }
 0x12f   : > { %1480 = vst.msk [vmem:[%s2373_s4 + $0x50] sm:$0xff] %vm1229_vm4, %v1464_v22  ;;  %v1353_v42 = vadd.f32 %v1333_v14, %v1301_v19  ;;  %v1381_v43 = vld [vmem:[#allocation2 + $0x109] ss:$2 sm:$0xff]  ;;  %v1413_v44 = vld [vmem:[#allocation2 + $0x10a] ss:$2 sm:$0xff]  ;;  %v975_v45 = vrot.slane %v931_v12, 1  ;;  %v871_v56 = vadd.f32 %v2505_v59, %v2475_v39  ;;  %v887_v19 = vadd.f32 %v2507_v60, %v2477_v3 }
 0x130   : > { %v1032_v46 = vrot.slane %v931_v12, 7  ;;  %v1433_v47 = vadd.f32 %v1413_v44, %v1381_v43  ;;  %v983_v17 = vrot.slane %v947_v23, 1  ;;  %v1056_v48 = vrot.slane %v947_v23, 7  ;;  %v2520_v12 = vpop.f32.mrf.mxu0 }
 0x131   : > { %v902_v49 = vmul.f32 3.0, %v870_v5  ;;  %v1441_v51 = vmul.f32 3.0, %v1425_v2  ;;  %v918_v52 = vmul.f32 3.0, %v886_v9  ;;  %v901_v58 = vmul.f32 3.0, %v869_v31 }
 0x132   : > { %v1034_v34 = vsel %vm1019_vm1, %v1032_v46, %v1033_v15  ;;  %v1184_v37 = vsel %vm1019_vm1, %v975_v45, %v1032_v46  ;;  %v1449_v53 = vmul.f32 3.0, %v1433_v47  ;;  %v1058_v54 = vsel %vm1019_vm1, %v1056_v48, %v1057_v13  ;;  %v2545_v3 = vpop.f32.mrf.mxu0 }
 0x133   : > { %1243 = vst.msk [vmem:[#allocation2 + $0x60] sm:$0xff] %vm1229_vm4, %v1184_v37  ;;  %1244 = vst.msk [vmem:[#allocation2 + $0x68] sm:$0xff] %vm1229_vm4, %v1034_v34  ;;  %v1192_v57 = vsel %vm1019_vm1, %v983_v17, %v1056_v48  ;;  %v1457_v61 = vadd.f32 %v1441_v51, %v1345_v32  ;;  %v917_v62 = vmul.f32 3.0, %v885_v38  ;;  %v934_v63 = vadd.f32 %v902_v49, %v838_v41 }
 0x134   : > { %1267 = vst.msk [vmem:[#allocation2 + $0x120] sm:$0xff] %vm1229_vm4, %v1192_v57  ;;  %1268 = vst.msk [vmem:[#allocation2 + $0x128] sm:$0xff] %vm1229_vm4, %v1058_v54  ;;  %v950_v0 = vadd.f32 %v918_v52, %v854_v20  ;;  %v1465_v5 = vadd.f32 %v1449_v53, %v1353_v42  ;;  %v837_v9 = vadd.f32 %v2475_v39, %v2398_v35  ;;  %v2522_v35 = vpop.f32.mrf.mxu1  ;;  %v903_v51 = vmul.f32 3.0, %v871_v56 }
 0x135   : > { %v872_v15 = vadd.f32 %v1782_v1, %v2461_v50  ;;  %1473 = vst.msk [vmem:[%s2373_s4 + $0x18] sm:$0xff] %vm1229_vm4, %v1457_v61  ;;  %v1036_v8 = vrot.slane %v934_v63, 7  ;;  %v1121_v7 = vrot.slane %v934_v63, 5  ;;  %v1153_v11 = vrot.slane %v934_v63, 3 }
 0x136   : > { %v1060_v13 = vrot.slane %v950_v0, 7  ;;  %1481 = vst.msk [vmem:[%s2373_s4 + $0x58] sm:$0xff] %vm1229_vm4, %v1465_v5  ;;  %v1129_v29 = vrot.slane %v950_v0, 5  ;;  %v1161_v18 = vrot.slane %v950_v0, 3  ;;  %v933_v22 = vadd.f32 %v901_v58, %v837_v9  ;;  %v2547_v44 = vpop.f32.mrf.mxu1 }
 0x137   : > { %v949_v55 = vadd.f32 %v917_v62, %v853_v28  ;;  %v1201_v36 = vsel %vm1019_vm1, %v1036_v8, %v1121_v7  ;;  %v904_v23 = vmul.f32 3.0, %v872_v15  ;;  %v888_v50 = vadd.f32 %v2496_v21, %v2463_v4  ;;  %v1788_v62 = vpop.f32.mrf.mxu0 }
 0x138   : > { %v1218_v24 = vsel %vm1212_vm2, %v1201_v36, %v1153_v11  ;;  %v1209_v6 = vsel %vm1019_vm1, %v1060_v13, %v1129_v29  ;;  %v976_v27 = vrot.slane %v933_v22, 1  ;;  %v1035_v30 = vrot.slane %v933_v22, 7  ;;  %v1836_v63 = vpop.f32.mrf.mxu1 }
 0x139   : > { %1248 = vst.msk [vmem:[#allocation2 + $0x88] sm:$0x7] %vm1232_vm3, %v1218_v24  ;;  %v1226_v33 = vsel %vm1212_vm2, %v1209_v6, %v1161_v18  ;;  %v840_v4 = vadd.f32 %v2520_v12, %v2431_v16  ;;  %v2538_v39 = vadd.f32 %v2520_v12, %v1782_v1  ;;  %v856_v43 = vadd.f32 %v2522_v35, %v2433_v10  ;;  %v658_v24 = vpop.f32.mrf.mxu0 }
 0x13a   : > { %v1287_v31 = vld [vmem:[#allocation2 + $0x60] ss:$2 sm:$0xff]  ;;  %v1319_v38 = vld [vmem:[#allocation2 + $0x63] ss:$2 sm:$0xff]  ;;  %1272 = vst.msk [vmem:[#allocation2 + $0x148] sm:$0x7] %vm1232_vm3, %v1226_v33  ;;  %v1037_v2 = vsel %vm1019_vm1, %v1035_v30, %v1036_v8  ;;  %v1185_v42 = vsel %vm1019_vm1, %v976_v27, %v1035_v30  ;;  %v2557_v57 = vadd.f32 %v2522_v35, %v2496_v21  ;;  %v839_v61 = vadd.f32 %v2545_v3, %v2438_v25 }
 0x13b   : > { %v1367_v32 = vld [vmem:[#allocation2 + $0x61] ss:$2 sm:$0xff]  ;;  %v1346_v14 = vadd.f32 %v1319_v38, %v1287_v31  ;;  %v1399_v40 = vld [vmem:[#allocation2 + $0x62] ss:$2 sm:$0xff]  ;;  %1246 = vst.msk [vmem:[#allocation2 + $0x78] sm:$0xff] %vm1229_vm4, %v1185_v42  ;;  %1247 = vst.msk [vmem:[#allocation2 + $0x80] sm:$0xff] %vm1229_vm4, %v1037_v2  ;;  %v936_v53 = vadd.f32 %v904_v23, %v840_v4  ;;  %v855_v25 = vadd.f32 %v2547_v44, %v2440_v26 }
 0x13c   : > { %v1303_v41 = vld [vmem:[#allocation2 + $0x120] ss:$2 sm:$0xff]  ;;  %v1335_v20 = vld [vmem:[#allocation2 + $0x123] ss:$2 sm:$0xff]  ;;  %v1426_v16 = vadd.f32 %v1399_v40, %v1367_v32  ;;  %v984_v47 = vrot.slane %v949_v55, 1  ;;  %v1059_v17 = vrot.slane %v949_v55, 7  ;;  %v935_v29 = vadd.f32 %v903_v51, %v839_v61 }
 0x13d   : > { %v1354_v1 = vadd.f32 %v1335_v20, %v1303_v41  ;;  %v1383_v45 = vld [vmem:[#allocation2 + $0x121] ss:$2 sm:$0xff]  ;;  %v1415_v46 = vld [vmem:[#allocation2 + $0x122] ss:$2 sm:$0xff]  ;;  %v920_v49 = vmul.f32 3.0, %v888_v50  ;;  %v919_v34 = vmul.f32 3.0, %v887_v19  ;;  %v857_v50 = vadd.f32 %v2547_v44, %v2507_v60 }
 0x13e   : > { %v1434_v48 = vadd.f32 %v1415_v46, %v1383_v45  ;;  %v1442_v37 = vmul.f32 3.0, %v1426_v16  ;;  %v1061_v10 = vsel %vm1019_vm1, %v1059_v17, %v1060_v13  ;;  %v1193_v52 = vsel %vm1019_vm1, %v984_v47, %v1059_v17 }
 0x13f   : > { %1270 = vst.msk [vmem:[#allocation2 + $0x138] sm:$0xff] %vm1229_vm4, %v1193_v52  ;;  %1271 = vst.msk [vmem:[#allocation2 + $0x140] sm:$0xff] %vm1229_vm4, %v1061_v10  ;;  %v952_v58 = vadd.f32 %v920_v49, %v856_v43  ;;  %v1039_v5 = vrot.slane %v936_v53, 7  ;;  %v1122_v9 = vrot.slane %v936_v53, 5  ;;  %v1154_v28 = vrot.slane %v936_v53, 3 }
 0x140   : > { %v1450_v54 = vmul.f32 3.0, %v1434_v48  ;;  %v1458_v0 = vadd.f32 %v1442_v37, %v1346_v14  ;;  %v841_v13 = vadd.f32 %v2545_v3, %v2505_v59  ;;  %v874_v56 = vadd.f32 %v1788_v62, %v2520_v12  ;;  %v818_v59 = vpop.f32.mrf.mxu1 }
 0x141   : > { %v1063_v8 = vrot.slane %v952_v58, 7  ;;  %v1130_v7 = vrot.slane %v952_v58, 5  ;;  %v1162_v11 = vrot.slane %v952_v58, 3  ;;  %v1202_v21 = vsel %vm1019_vm1, %v1039_v5, %v1122_v9 }
 0x142   : > { %v1466_v15 = vadd.f32 %v1450_v54, %v1354_v1  ;;  %1474 = vst.msk [vmem:[%s2373_s4 + $0x20] sm:$0xff] %vm1229_vm4, %v1458_v0  ;;  %v1289_v18 = vld [vmem:[#allocation2 + $0x78] ss:$2 sm:$0xff]  ;;  %v1321_v22 = vld [vmem:[#allocation2 + $0x7b] ss:$2 sm:$0xff]  ;;  %v1219_v36 = vsel %vm1212_vm2, %v1202_v21, %v1154_v28  ;;  %v977_v30 = vrot.slane %v935_v29, 1  ;;  %v951_v32 = vadd.f32 %v919_v34, %v855_v25 }
 0x143   : > { %v1369_v55 = vld [vmem:[#allocation2 + $0x79] ss:$2 sm:$0xff]  ;;  %v1210_v23 = vsel %vm1019_vm1, %v1063_v8, %v1130_v7  ;;  %v1347_v6 = vadd.f32 %v1321_v22, %v1289_v18  ;;  %v1401_v27 = vld [vmem:[#allocation2 + $0x7a] ss:$2 sm:$0xff]  ;;  %1251 = vst.msk [vmem:[#allocation2 + $0xa0] sm:$0x7] %vm1232_vm3, %v1219_v36  ;;  %v890_v19 = vadd.f32 %v1836_v63, %v2522_v35  ;;  %v873_v41 = vadd.f32 %v658_v24, %v2545_v3 }
 0x144   : > { %1482 = vst.msk [vmem:[%s2373_s4 + $0x60] sm:$0xff] %vm1229_vm4, %v1466_v15  ;;  %v1227_v26 = vsel %vm1212_vm2, %v1210_v23, %v1162_v11  ;;  %v1038_v31 = vrot.slane %v935_v29, 7  ;;  %v1427_v38 = vadd.f32 %v1401_v27, %v1369_v55  ;;  %v906_v33 = vmul.f32 3.0, %v874_v56 }
 0x145   : > { %1275 = vst.msk [vmem:[#allocation2 + $0x160] sm:$0x7] %vm1232_vm3, %v1227_v26  ;;  %v889_v20 = vadd.f32 %v818_v59, %v2547_v44  ;;  %v985_v16 = vrot.slane %v951_v32, 1  ;;  %v1062_v35 = vrot.slane %v951_v32, 7  ;;  %v922_v46 = vmul.f32 3.0, %v890_v19 }
 0x146   : > { %v1305_v60 = vld [vmem:[#allocation2 + $0x138] ss:$2 sm:$0xff]  ;;  %v1337_v4 = vld [vmem:[#allocation2 + $0x13b] ss:$2 sm:$0xff]  ;;  %v1040_v14 = vsel %vm1019_vm1, %v1038_v31, %v1039_v5  ;;  %v1186_v40 = vsel %vm1019_vm1, %v977_v30, %v1038_v31  ;;  %v1443_v2 = vmul.f32 3.0, %v1427_v38  ;;  %v938_v45 = vadd.f32 %v906_v33, %v2538_v39 }
 0x147   : > { %v1385_v12 = vld [vmem:[#allocation2 + $0x139] ss:$2 sm:$0xff]  ;;  %v1355_v42 = vadd.f32 %v1337_v4, %v1305_v60  ;;  %v1417_v43 = vld [vmem:[#allocation2 + $0x13a] ss:$2 sm:$0xff]  ;;  %1249 = vst.msk [vmem:[#allocation2 + $0x90] sm:$0xff] %vm1229_vm4, %v1186_v40  ;;  %1250 = vst.msk [vmem:[#allocation2 + $0x98] sm:$0xff] %vm1229_vm4, %v1040_v14  ;;  %v1064_v3 = vsel %vm1019_vm1, %v1062_v35, %v1063_v8  ;;  %v1194_v44 = vsel %vm1019_vm1, %v985_v16, %v1062_v35 }
 0x148   : > { %v1435_v1 = vadd.f32 %v1417_v43, %v1385_v12  ;;  %v905_v47 = vmul.f32 3.0, %v873_v41  ;;  %v1459_v17 = vadd.f32 %v1443_v2, %v1347_v6  ;;  %v921_v48 = vmul.f32 3.0, %v889_v20  ;;  %1273 = vst.msk [vmem:[#allocation2 + $0x150] sm:$0xff] %vm1229_vm4, %v1194_v44  ;;  %1274 = vst.msk [vmem:[#allocation2 + $0x158] sm:$0xff] %vm1229_vm4, %v1064_v3 }
 0x149   : > { %v1042_v51 = vrot.slane %v938_v45, 7  ;;  %v1123_v34 = vrot.slane %v938_v45, 5  ;;  %v1155_v37 = vrot.slane %v938_v45, 3  ;;  %v954_v39 = vadd.f32 %v922_v46, %v2557_v57 }
 0x14a   : > { %v1451_v49 = vmul.f32 3.0, %v1435_v1  ;;  %1475 = vst.msk [vmem:[%s2373_s4 + $0x28] sm:$0xff] %vm1229_vm4, %v1459_v17  ;;  %v937_v10 = vadd.f32 %v905_v47, %v841_v13  ;;  %v953_v54 = vadd.f32 %v921_v48, %v857_v50 }
 0x14b   : > { %v1203_v53 = vsel %vm1019_vm1, %v1042_v51, %v1123_v34  ;;  %v1066_v61 = vrot.slane %v954_v39, 7  ;;  %v1131_v62 = vrot.slane %v954_v39, 5  ;;  %v1163_v63 = vrot.slane %v954_v39, 3 }
 0x14c   : > { %v1467_v52 = vadd.f32 %v1451_v49, %v1355_v42  ;;  %v1220_v58 = vsel %vm1212_vm2, %v1203_v53, %v1155_v37  ;;  %v978_v15 = vrot.slane %v937_v10, 1  ;;  %v1041_v8 = vrot.slane %v937_v10, 7 }
 0x14d   : > { %1254 = vst.msk [vmem:[#allocation2 + $0xb8] sm:$0x7] %vm1232_vm3, %v1220_v58  ;;  %v1211_v57 = vsel %vm1019_vm1, %v1066_v61, %v1131_v62  ;;  %v986_v21 = vrot.slane %v953_v54, 1  ;;  %v1065_v13 = vrot.slane %v953_v54, 7 }
 0x14e   : > { %1483 = vst.msk [vmem:[%s2373_s4 + $0x68] sm:$0xff] %vm1229_vm4, %v1467_v52  ;;  %v1291_v0 = vld [vmem:[#allocation2 + $0x90] ss:$2 sm:$0xff]  ;;  %v1371_v5 = vld [vmem:[#allocation2 + $0x91] ss:$2 sm:$0xff]  ;;  %v1228_v11 = vsel %vm1212_vm2, %v1211_v57, %v1163_v63  ;;  %v1043_v18 = vsel %vm1019_vm1, %v1041_v8, %v1042_v51  ;;  %v1187_v22 = vsel %vm1019_vm1, %v978_v15, %v1041_v8 }
 0x14f   : > { %v1323_v9 = vld [vmem:[#allocation2 + $0x93] ss:$2 sm:$0xff]  ;;  %v1403_v28 = vld [vmem:[#allocation2 + $0x92] ss:$2 sm:$0xff]  ;;  %1278 = vst.msk [vmem:[#allocation2 + $0x178] sm:$0x7] %vm1232_vm3, %v1228_v11  ;;  %v1067_v56 = vsel %vm1019_vm1, %v1065_v13, %v1066_v61  ;;  %v1195_v24 = vsel %vm1019_vm1, %v986_v21, %v1065_v13 }
 0x150   : > { %v1428_v7 = vadd.f32 %v1403_v28, %v1371_v5  ;;  %v1307_v29 = vld [vmem:[#allocation2 + $0x150] ss:$2 sm:$0xff]  ;;  %v1387_v25 = vld [vmem:[#allocation2 + $0x151] ss:$2 sm:$0xff]  ;;  %v1348_v55 = vadd.f32 %v1323_v9, %v1291_v0  ;;  %1252 = vst.msk [vmem:[#allocation2 + $0xa8] sm:$0xff] %vm1229_vm4, %v1187_v22  ;;  %1253 = vst.msk [vmem:[#allocation2 + $0xb0] sm:$0xff] %vm1229_vm4, %v1043_v18 }
 0x151   : > { %v1339_v23 = vld [vmem:[#allocation2 + $0x153] ss:$2 sm:$0xff]  ;;  %v1419_v50 = vld [vmem:[#allocation2 + $0x152] ss:$2 sm:$0xff]  ;;  %1276 = vst.msk [vmem:[#allocation2 + $0x168] sm:$0xff] %vm1229_vm4, %v1195_v24  ;;  %1277 = vst.msk [vmem:[#allocation2 + $0x170] sm:$0xff] %vm1229_vm4, %v1067_v56 }
 0x152   : > { %v1444_v36 = vmul.f32 3.0, %v1428_v7  ;;  %v1436_v59 = vadd.f32 %v1419_v50, %v1387_v25  ;;  %v1356_v27 = vadd.f32 %v1339_v23, %v1307_v29 }
 0x154   : > { %v1460_v6 = vadd.f32 %v1444_v36, %v1348_v55  ;;  %v1452_v26 = vmul.f32 3.0, %v1436_v59 }
 0x156   : > { %1476 = vst.msk [vmem:[%s2373_s4 + $0x30] sm:$0xff] %vm1229_vm4, %v1460_v6  ;;  %v1468_v30 = vadd.f32 %v1452_v26, %v1356_v27 }
 0x157   : > { %v1293_v31 = vld [vmem:[#allocation2 + $0xa8] ss:$2 sm:$0xff]  ;;  %v1373_v38 = vld [vmem:[#allocation2 + $0xa9] ss:$2 sm:$0xff] }
 0x158   : > { %1484 = vst.msk [vmem:[%s2373_s4 + $0x70] sm:$0xff] %vm1229_vm4, %v1468_v30  ;;  %v1325_v32 = vld [vmem:[#allocation2 + $0xab] ss:$2 sm:$0xff]  ;;  %v1405_v33 = vld [vmem:[#allocation2 + $0xaa] ss:$2 sm:$0xff] }
 0x159   : > { %v1309_v19 = vld [vmem:[#allocation2 + $0x168] ss:$2 sm:$0xff]  ;;  %v1429_v60 = vadd.f32 %v1405_v33, %v1373_v38  ;;  %v1341_v4 = vld [vmem:[#allocation2 + $0x16b] ss:$2 sm:$0xff]  ;;  %v1349_v41 = vadd.f32 %v1325_v32, %v1293_v31 }
 0x15a   : > { %v1389_v12 = vld [vmem:[#allocation2 + $0x169] ss:$2 sm:$0xff]  ;;  %v1421_v14 = vld [vmem:[#allocation2 + $0x16a] ss:$2 sm:$0xff]  ;;  %v1357_v2 = vadd.f32 %v1341_v4, %v1309_v19 }
 0x15b   : > { %v1437_v40 = vadd.f32 %v1421_v14, %v1389_v12  ;;  %v1445_v20 = vmul.f32 3.0, %v1429_v60 }
 0x15d   : > { %v1453_v42 = vmul.f32 3.0, %v1437_v40  ;;  %v1461_v43 = vadd.f32 %v1445_v20, %v1349_v41 }
 0x15f   : > { %v1469_v16 = vadd.f32 %v1453_v42, %v1357_v2  ;;  %1477 = vst.msk [vmem:[%s2373_s4 + $0x38] sm:$0xff] %vm1229_vm4, %v1461_v43 }
 0x161   : > { %1485 = vst.msk [vmem:[%s2373_s4 + $0x78] sm:$0xff] %vm1229_vm4, %v1469_v16 }
 0x162   : > { %1948 = shalt.err (!%p1945_p6)
}
 0x163   : > { %s1949_s26 = scalar_lea.hbm %s2618_s15, 2048  ;;  %s1953_s29 = scalar_lea.hbm %s2674_s2, 4096 }
 0x164   : > { %p1950_p7 = scmp.ne.s32.totalorder %s2618_s15, %s1949_s26  ;;  %p1954_p13 = scmp.lt.s32.totalorder %s2618_s15, %s2674_s2 }
 0x165   : > { %p1955_p2 = scmp.lt.s32.totalorder %s1953_s29, %s1949_s26 }
 0x166   : > { %p1951_p10 = pnand %p1950_p7, %p2089_p9 }
 0x167   : > { %p1956_p8 = por %p1955_p2, %p1954_p13 }
 0x168   : > { %p1952_p4 = pneg %p1951_p10 }
 0x16a   : > { %p1957_p12 = pnand %p1956_p8, %p1952_p4 }
 0x16c   : > { %1960 = shalt.err (!%p1957_p12)
}
 0x16d   : > { %s2021_s21 = smov 128   ;;  %s2022_s4 = smov 8  }
 0x16e   : > { %1843 = dma.vmem_to_hbm [thread:$0]  (%p2089_p9), %s2620_s6, 2048, %s2618_s15, %s1487_s12, %s2021_s21, %s2021_s21, %s2022_s4  }
 0x16f PF: > { %s1518_s5 = sand.u32 1, %s1995_s9   ;;  %p2680_p0 = scmp.ge.s32.totalorder %s2015_s14, 2 }
 0x170   : > { %s1519_s7 = scalar_lea.sflag [#allocation5], %s1518_s5 }
 0x171   : > { %p1850_p1 = pnand %p2680_p0, %p2096_p11 }
 0x173   : > { %p1851_p3 = pneg %p1850_p1 }
 0x175   : > { %1990 = dma.done.wait (%p1851_p3), %s1519_s7, 2048  }
 0x176   : > { %1992 = vsyncadd (%p1851_p3), %s1519_s7, 4294965248  ;;  %s18_s14 = sadd.s32 1, %s2015_s14   ;;  %s2681_s9 = smov %s1999_s10 }
 0x177   : > { %p15_p5 = scmp.ge.s32.totalorder %s18_s14, 4   ;;  %s2682_s10 = smov %s2003_s11 }
 0x178   : > { %s2683_s11 = smov %s2094_s23  ;;  %s2684_s12 = smov %s2011_s13 }
 0x179   : > { %s2685_s13 = smov %s2687_s17  ;;  %17 = sbr.rel (!%p15_p5) target bundleno = 6 (0x6), region = 136 }
 0x17e   :  { %1524 = vsyncpa [#allocation4], 1 }
 0x17f   :  { %1526 = vsyncpa [#allocation4 + $0x1], 1 }
 0x180   :  { %1527 = vsyncpa [#allocation5], 1 }
 0x181   :  { %1529 = vsyncpa [#allocation5 + $0x1], 1 }

</bundles_post_ra>
